<compile_context>
chip_gen: v7x
topology: tpu7x:2x2x1
jax: 0.10.0
libtpu: 0.0.40
codegen_flags: <defaults>
</compile_context>

<pallas_src>
import functools
import math

import jax
import jax.numpy as jnp
import numpy as np
from jax.experimental import pallas as pl
from jax.experimental.pallas import tpu as pltpu


# -----------------------------------------------------------------------------
# Pallas kernel: one C_out tile of a (k,1)-Conv2d layer (+bias, lrelu, mask).
# -----------------------------------------------------------------------------
def _conv_kernel(x_ref, w_ref, b_ref, m_ref, y_ref, *, K, stride, H_out,
                 slope, apply_lrelu):
    """x_ref : (G, stride, NP, Cin)  zero-padded input, H regrouped by stride
       w_ref : (K, Cin, tco)         conv weight tile (bf16)
       b_ref : (1, tco)              bias tile (f32)
       m_ref : (M, 1)                min-pooled {0,1} output mask (f32)
       y_ref : (M, tco)              output tile, M = H_out * NP
    """
    NP = x_ref.shape[2]
    Cin = x_ref.shape[3]
    M = H_out * NP

    xv = x_ref[...]                        # full block, value ops only below
    wv = w_ref[...]
    acc = jnp.zeros((M, y_ref.shape[1]), jnp.float32)

    for dk in range(K):                    # tap dk touches input row stride*h + dk
        q, p = dk // stride, dk % stride   # = stride*(h+q) + p
        xs = xv[q:q + H_out, p].reshape(M, Cin)          # (M, Cin), contiguous slice
        if Cin == 1:
            # Degenerate rank-1 update: keep it on the VPU, not the MXU.
            acc = acc + xs.astype(jnp.float32) * wv[dk].astype(jnp.float32)
        else:
            acc = acc + jnp.dot(xs, wv[dk], preferred_element_type=jnp.float32)

    acc = acc + b_ref[...]                 # (1, tco) broadcast over rows
    if apply_lrelu:
        acc = jnp.maximum(acc, slope * acc)
    acc = acc * m_ref[...]                 # (M, 1) broadcast over channels
    y_ref[...] = acc.astype(y_ref.dtype)


def conv_layer(xg, m_flat, w, b, *, stride, H_out, apply_lrelu, slope,
               out_dtype):
    """xg: (G, stride, NP, Cin), m_flat: (H_out*NP, 1) f32, w: (K, Cin, Cout),
       b: (1, Cout) f32.  Returns y of shape (H_out*NP, Cout)."""
    G, s, NP, Cin = xg.shape
    K, _, Cout = w.shape
    M = H_out * NP

    if Cout % 256 == 0:        # fills the 2x256x256 MXU on v6e/v7x
        tco = 256
    elif Cout % 128 == 0:
        tco = 128
    else:
        tco = Cout
    n_co = Cout // tco

    kernel = functools.partial(_conv_kernel, K=K, stride=stride, H_out=H_out,
                               slope=slope, apply_lrelu=apply_lrelu)
    return pl.pallas_call(
        kernel,
        out_shape=jax.ShapeDtypeStruct((M, Cout), out_dtype),
        grid=(n_co,),
        in_specs=[
            # input / mask / bias: input block index is constant -> resident,
            # each weight tile streamed exactly once.
            pl.BlockSpec((G, s, NP, Cin), lambda j: (0, 0, 0, 0)),
            pl.BlockSpec((K, Cin, tco), lambda j: (0, 0, j)),
            pl.BlockSpec((1, tco), lambda j: (0, j)),
            pl.BlockSpec((M, 1), lambda j: (0, 0)),
        ],
        out_specs=pl.BlockSpec((M, tco), lambda j: (0, j)),
        compiler_params=pltpu.CompilerParams(
            dimension_semantics=("parallel",),
            vmem_limit_bytes=48 * 1024 * 1024),
    )(xg, w, b, m_flat)


# -----------------------------------------------------------------------------
# Module forward (plain-JAX glue: reflect pad, layout, mask min-pool).
# -----------------------------------------------------------------------------
def sequence_discriminator_p_forward(x, mask, params, *, period, stride=3,
                                     lrelu_slope=0.1,
                                     compute_dtype=jnp.bfloat16):
    """x: (b, t) f32, mask: (b, 1, t) bool. Returns (x, x_mask, fmap, masks)."""
    b, t = x.shape
    x = x.astype(jnp.float32)
    if t % period != 0:
        n_pad = period - t % period
        x = jnp.pad(x, ((0, 0), (0, n_pad)), mode='reflect')
        mask = jnp.pad(mask, ((0, 0), (0, 0), (0, n_pad)), constant_values=False)
        t += n_pad
    H = t // period
    N = b * period
    NP = ((N + 15) // 16) * 16          # sublane-align the row axis (bf16 tile)

    # NCHW view (b,1,H,period) -> kernel layout (H, N, C=1), n = b_idx*period + w
    xk = jnp.transpose(x.reshape(b, H, period), (1, 0, 2)).reshape(H, N, 1)
    mk = jnp.transpose(mask.reshape(b, H, period), (1, 0, 2)).reshape(H, N)
    mk = mk.astype(jnp.float32)
    if NP > N:
        xk = jnp.pad(xk, ((0, 0), (0, NP - N), (0, 0)))
        mk = jnp.pad(mk, ((0, 0), (0, NP - N)))       # padded rows masked off
    xk = xk.astype(compute_dtype)

    def to_nchw(y):                      # (Hl, N, C) -> (b, C, Hl, period)
        Hl, _, C = y.shape
        return jnp.transpose(y.reshape(Hl, b, period, C), (1, 3, 0, 2))

    def mask_to_nchw(m):                 # (Hl, NP) -> (b, 1, Hl, period) bool
        Hl = m.shape[0]
        mm = jnp.transpose(m[:, :N].reshape(Hl, b, period), (1, 0, 2))
        return (mm > 0.5)[:, None]

    def run_layer(xc, mc, w, bias, *, s, apply_lrelu):
        Hc, NPc, Cin = xc.shape
        K = w.shape[0]
        pad = K // 2
        Hp = Hc + 2 * pad
        H_out = (Hp - K) // s + 1
        G = -(-Hp // s)                  # ceil(Hp / s)
        # zero-pad H (conv pad + round up to s) and regroup: row = s*g + phase
        xpad = jnp.pad(xc, ((pad, G * s - Hp + pad), (0, 0), (0, 0)))
        xg = xpad.reshape(G, s, NPc, Cin)
        # mask update == -maxpool(-m): min-pool, pad with 1.0 ("ignore")
        mpad = jnp.pad(mc, ((pad, pad), (0, 0)), constant_values=1.0)
        pooled = jax.lax.reduce_window(mpad, jnp.inf, jax.lax.min,
                                       (K, 1), (s, 1), 'VALID')
        m_out = (pooled > 0.5).astype(jnp.float32)            # (H_out, NP)
        y = conv_layer(xg, m_out.reshape(H_out * NPc, 1),
                       w.astype(compute_dtype),
                       bias.reshape(1, -1).astype(jnp.float32),
                       stride=s, H_out=H_out, apply_lrelu=apply_lrelu,
                       slope=lrelu_slope, out_dtype=compute_dtype)
        return y.reshape(H_out, NPc, -1), m_out

    fmap, masks = [], []
    strides = [stride, stride, stride, stride, 1]
    cur, cur_m = xk, mk
    for i, (w, bias) in enumerate(params['convs']):
        cur, cur_m = run_layer(cur, cur_m, w, bias, s=strides[i],
                               apply_lrelu=True)
        if i > 0:
            fmap.append(to_nchw(cur[:, :N, :]).astype(jnp.float32))
            masks.append(mask_to_nchw(cur_m))

    # conv_post: pad the single output channel to 128 lanes (lane-dense stores)
    wp, bp = params['conv_post']
    wp = jnp.pad(wp, ((0, 0), (0, 0), (0, 128 - wp.shape[2])))
    bp = jnp.pad(bp, ((0, 128 - bp.shape[0]),))
    cur, cur_m = run_layer(cur, cur_m, wp, bp, s=1, apply_lrelu=False)
    cur = cur[:, :, :1]                                       # real channel 0
    fmap.append(to_nchw(cur[:, :N, :]).astype(jnp.float32))
    masks.append(mask_to_nchw(cur_m))

    x_out = fmap[-1]                                          # (b, 1, H_last, period)
    x_flat = x_out.reshape(b, -1)
    x_mask = masks[-1].reshape(b, -1)
    return x_flat, x_mask, fmap, masks


# -----------------------------------------------------------------------------
# Deterministic parameter init (matches PyTorch Conv2d default init shapes/bounds)
# weights stored as (K, C_in, C_out)
# -----------------------------------------------------------------------------
def init_params(key, kernel_size=5, in_channels=1):
    chans = [in_channels, 32, 128, 512, 1024, 1024]
    convs = []
    for i in range(5):
        cin, cout = chans[i], chans[i + 1]
        key, k1, k2 = jax.random.split(key, 3)
        bound = 1.0 / math.sqrt(cin * kernel_size)
        w = jax.random.uniform(k1, (kernel_size, cin, cout), jnp.float32, -bound, bound)
        bb = jax.random.uniform(k2, (cout,), jnp.float32, -bound, bound)
        convs.append((w, bb))
    key, k1, k2 = jax.random.split(key, 3)
    bound = 1.0 / math.sqrt(1024 * 3)
    wp = jax.random.uniform(k1, (3, 1024, 1), jnp.float32, -bound, bound)
    bp = jax.random.uniform(k2, (1,), jnp.float32, -bound, bound)
    return {'convs': convs, 'conv_post': (wp, bp)}


# -----------------------------------------------------------------------------
# Pure-JAX reference (mirrors the PyTorch module) for a sanity check.
# -----------------------------------------------------------------------------
def _min_pool_h(m, K, s):
    pad = K // 2
    mp = jnp.pad(m, ((0, 0), (0, 0), (pad, pad), (0, 0)), constant_values=1.0)
    return jax.lax.reduce_window(mp, jnp.inf, jax.lax.min,
                                 (1, 1, K, 1), (1, 1, s, 1), 'VALID')


def ref_forward(x, mask, params, *, period, lrelu_slope=0.1):
    b, t = x.shape
    x = x[:, None, :].astype(jnp.float32)
    if t % period != 0:
        n_pad = period - t % period
        x = jnp.pad(x, ((0, 0), (0, 0), (0, n_pad)), mode='reflect')
        mask = jnp.pad(mask, ((0, 0), (0, 0), (0, n_pad)), constant_values=False)
        t += n_pad
    H = t // period
    x = x.reshape(b, 1, H, period)
    m = mask.reshape(b, 1, H, period).astype(jnp.float32)
    layers = list(params['convs']) + [params['conv_post']]
    strides = [3, 3, 3, 3, 1, 1]
    fmap, masks = [], []
    for i, (w, bias) in enumerate(layers):
        K = w.shape[0]
        wk = jnp.transpose(w, (2, 1, 0))[..., None]        # OIHW
        x = jax.lax.conv_general_dilated(
            x, wk, window_strides=(strides[i], 1),
            padding=[(K // 2, K // 2), (0, 0)],
            dimension_numbers=('NCHW', 'OIHW', 'NCHW'))
        x = x + bias[None, :, None, None]
        m = (_min_pool_h(m, K, strides[i]) > 0.5).astype(jnp.float32)
        if i < 5:
            x = jnp.where(x > 0, x, lrelu_slope * x)
        x = x * m
        if i > 0:
            fmap.append(x)
            masks.append(m > 0.5)
    return x.reshape(b, -1), masks[-1].reshape(b, -1), fmap, masks


if __name__ == "__main__":
    key = jax.random.PRNGKey(0)
    kp, kx = jax.random.split(key)
    params = init_params(kp)

    b, t, period = 2, 158, 4          # 158 % 4 != 0 -> exercises reflect pad
    kx1, _ = jax.random.split(kx)
    x = jax.random.normal(kx1, (b, t), jnp.float32)
    lengths = jnp.array([158, 100])
    mask = jnp.arange(t)[None, None, :] < lengths[:, None, None]   # (b, 1, t) bool

    out = sequence_discriminator_p_forward(x, mask, params, period=period)
    out = jax.block_until_ready(out)
    x_flat, x_mask, fmap, masks = out

    # Sanity check against a pure-JAX reference of the PyTorch module.
    # (tolerance loosened because the kernel path uses bf16 operands with
    #  f32 accumulation; masks must match exactly.)
    rx, rm, rfmap, rmasks = ref_forward(x, mask, params, period=period)
    np.testing.assert_allclose(np.asarray(x_flat), np.asarray(rx),
                               atol=3e-2, rtol=3e-2)
    for f, rf in zip(fmap, rfmap):
        assert f.shape == rf.shape
        np.testing.assert_allclose(np.asarray(f), np.asarray(rf),
                                   atol=3e-2, rtol=3e-2)
    assert bool(jnp.all(x_mask == rm))
    assert all(mm.shape == rr.shape for mm, rr in zip(masks, rmasks))
    assert all(bool(jnp.all(mm == rr)) for mm, rr in zip(masks, rmasks))

    print("KERNEL_OK")
</pallas_src>

<mosaic_0001>
module attributes {stable_mosaic.version = 11 : i64} {
  func.func @_conv_kernel(%arg0: i32, %arg1: memref<15x3x16x1xbf16, #tpu.memory_space<vmem>>, %arg2: memref<5x1x32xbf16, #tpu.memory_space<vmem>>, %arg3: memref<1x32xf32, #tpu.memory_space<vmem>>, %arg4: memref<224x1xf32, #tpu.memory_space<vmem>>, %arg5: memref<224x32xbf16, #tpu.memory_space<vmem>>) attributes {dimension_semantics = [#tpu.dimension_semantics<parallel>], iteration_bounds = array<i64: 1>, scalar_prefetch = 0 : i64, scratch_operands = 0 : i64, tpu.core_type = #tpu.core_type<tc>, window_params = [{pipeline_mode = #tpu.pipeline_mode<synchronous>, transform_indices = @transform_0, window_bounds = array<i64: 15, 3, 16, 1>}, {transform_indices = @transform_1, window_bounds = array<i64: 5, 1, 32>}, {transform_indices = @transform_2, window_bounds = array<i64: 1, 32>}, {pipeline_mode = #tpu.pipeline_mode<synchronous>, transform_indices = @transform_3, window_bounds = array<i64: 224, 1>}, {transform_indices = @transform_4, window_bounds = array<i64: 224, 32>}]} {
    %c0 = arith.constant 0 : index
    %c0_0 = arith.constant 0 : index
    %c0_1 = arith.constant 0 : index
    %c0_2 = arith.constant 0 : index
    %0 = vector.load %arg1[%c0, %c0_0, %c0_1, %c0_2] : memref<15x3x16x1xbf16, #tpu.memory_space<vmem>>, vector<15x3x16x1xbf16>
    %c0_3 = arith.constant 0 : index
    %c0_4 = arith.constant 0 : index
    %c0_5 = arith.constant 0 : index
    %1 = vector.load %arg2[%c0_3, %c0_4, %c0_5] : memref<5x1x32xbf16, #tpu.memory_space<vmem>>, vector<5x1x32xbf16>
    %cst = arith.constant 0.000000e+00 : f32
    %2 = vector.broadcast %cst : f32 to vector<224x32xf32>
    %3 = vector.extract_strided_slice %0 {offsets = [0, 0, 0, 0], sizes = [14, 1, 16, 1], strides = [1, 1, 1, 1]} : vector<15x3x16x1xbf16> to vector<14x1x16x1xbf16>
    %4 = vector.shape_cast %3 : vector<14x1x16x1xbf16> to vector<14x16x1xbf16>
    %5 = vector.shape_cast %4 : vector<14x16x1xbf16> to vector<224x1xbf16>
    %6 = arith.extf %5 : vector<224x1xbf16> to vector<224x1xf32>
    %7 = vector.extract_strided_slice %1 {offsets = [0, 0, 0], sizes = [1, 1, 32], strides = [1, 1, 1]} : vector<5x1x32xbf16> to vector<1x1x32xbf16>
    %8 = vector.shape_cast %7 : vector<1x1x32xbf16> to vector<1x32xbf16>
    %9 = arith.extf %8 : vector<1x32xbf16> to vector<1x32xf32>
    %10 = vector.broadcast %6 : vector<224x1xf32> to vector<224x32xf32>
    %11 = vector.broadcast %9 : vector<1x32xf32> to vector<224x32xf32>
    %12 = arith.mulf %10, %11 : vector<224x32xf32>
    %13 = arith.addf %2, %12 : vector<224x32xf32>
    %14 = vector.extract_strided_slice %0 {offsets = [0, 1, 0, 0], sizes = [14, 1, 16, 1], strides = [1, 1, 1, 1]} : vector<15x3x16x1xbf16> to vector<14x1x16x1xbf16>
    %15 = vector.shape_cast %14 : vector<14x1x16x1xbf16> to vector<14x16x1xbf16>
    %16 = vector.shape_cast %15 : vector<14x16x1xbf16> to vector<224x1xbf16>
    %17 = arith.extf %16 : vector<224x1xbf16> to vector<224x1xf32>
    %18 = vector.extract_strided_slice %1 {offsets = [1, 0, 0], sizes = [1, 1, 32], strides = [1, 1, 1]} : vector<5x1x32xbf16> to vector<1x1x32xbf16>
    %19 = vector.shape_cast %18 : vector<1x1x32xbf16> to vector<1x32xbf16>
    %20 = arith.extf %19 : vector<1x32xbf16> to vector<1x32xf32>
    %21 = vector.broadcast %17 : vector<224x1xf32> to vector<224x32xf32>
    %22 = vector.broadcast %20 : vector<1x32xf32> to vector<224x32xf32>
    %23 = arith.mulf %21, %22 : vector<224x32xf32>
    %24 = arith.addf %13, %23 : vector<224x32xf32>
    %25 = vector.extract_strided_slice %0 {offsets = [0, 2, 0, 0], sizes = [14, 1, 16, 1], strides = [1, 1, 1, 1]} : vector<15x3x16x1xbf16> to vector<14x1x16x1xbf16>
    %26 = vector.shape_cast %25 : vector<14x1x16x1xbf16> to vector<14x16x1xbf16>
    %27 = vector.shape_cast %26 : vector<14x16x1xbf16> to vector<224x1xbf16>
    %28 = arith.extf %27 : vector<224x1xbf16> to vector<224x1xf32>
    %29 = vector.extract_strided_slice %1 {offsets = [2, 0, 0], sizes = [1, 1, 32], strides = [1, 1, 1]} : vector<5x1x32xbf16> to vector<1x1x32xbf16>
    %30 = vector.shape_cast %29 : vector<1x1x32xbf16> to vector<1x32xbf16>
    %31 = arith.extf %30 : vector<1x32xbf16> to vector<1x32xf32>
    %32 = vector.broadcast %28 : vector<224x1xf32> to vector<224x32xf32>
    %33 = vector.broadcast %31 : vector<1x32xf32> to vector<224x32xf32>
    %34 = arith.mulf %32, %33 : vector<224x32xf32>
    %35 = arith.addf %24, %34 : vector<224x32xf32>
    %36 = vector.extract_strided_slice %0 {offsets = [1, 0, 0, 0], sizes = [14, 1, 16, 1], strides = [1, 1, 1, 1]} : vector<15x3x16x1xbf16> to vector<14x1x16x1xbf16>
    %37 = vector.shape_cast %36 : vector<14x1x16x1xbf16> to vector<14x16x1xbf16>
    %38 = vector.shape_cast %37 : vector<14x16x1xbf16> to vector<224x1xbf16>
    %39 = arith.extf %38 : vector<224x1xbf16> to vector<224x1xf32>
    %40 = vector.extract_strided_slice %1 {offsets = [3, 0, 0], sizes = [1, 1, 32], strides = [1, 1, 1]} : vector<5x1x32xbf16> to vector<1x1x32xbf16>
    %41 = vector.shape_cast %40 : vector<1x1x32xbf16> to vector<1x32xbf16>
    %42 = arith.extf %41 : vector<1x32xbf16> to vector<1x32xf32>
    %43 = vector.broadcast %39 : vector<224x1xf32> to vector<224x32xf32>
    %44 = vector.broadcast %42 : vector<1x32xf32> to vector<224x32xf32>
    %45 = arith.mulf %43, %44 : vector<224x32xf32>
    %46 = arith.addf %35, %45 : vector<224x32xf32>
    %47 = vector.extract_strided_slice %0 {offsets = [1, 1, 0, 0], sizes = [14, 1, 16, 1], strides = [1, 1, 1, 1]} : vector<15x3x16x1xbf16> to vector<14x1x16x1xbf16>
    %48 = vector.shape_cast %47 : vector<14x1x16x1xbf16> to vector<14x16x1xbf16>
    %49 = vector.shape_cast %48 : vector<14x16x1xbf16> to vector<224x1xbf16>
    %50 = arith.extf %49 : vector<224x1xbf16> to vector<224x1xf32>
    %51 = vector.extract_strided_slice %1 {offsets = [4, 0, 0], sizes = [1, 1, 32], strides = [1, 1, 1]} : vector<5x1x32xbf16> to vector<1x1x32xbf16>
    %52 = vector.shape_cast %51 : vector<1x1x32xbf16> to vector<1x32xbf16>
    %53 = arith.extf %52 : vector<1x32xbf16> to vector<1x32xf32>
    %54 = vector.broadcast %50 : vector<224x1xf32> to vector<224x32xf32>
    %55 = vector.broadcast %53 : vector<1x32xf32> to vector<224x32xf32>
    %56 = arith.mulf %54, %55 : vector<224x32xf32>
    %57 = arith.addf %46, %56 : vector<224x32xf32>
    %c0_6 = arith.constant 0 : index
    %c0_7 = arith.constant 0 : index
    %58 = vector.load %arg3[%c0_6, %c0_7] : memref<1x32xf32, #tpu.memory_space<vmem>>, vector<1x32xf32>
    %59 = vector.broadcast %58 : vector<1x32xf32> to vector<224x32xf32>
    %60 = arith.addf %57, %59 : vector<224x32xf32>
    %cst_8 = arith.constant 1.000000e-01 : f32
    %61 = vector.broadcast %cst_8 : f32 to vector<224x32xf32>
    %62 = arith.mulf %61, %60 : vector<224x32xf32>
    %63 = arith.maximumf %60, %62 : vector<224x32xf32>
    %c0_9 = arith.constant 0 : index
    %c0_10 = arith.constant 0 : index
    %64 = vector.load %arg4[%c0_9, %c0_10] : memref<224x1xf32, #tpu.memory_space<vmem>>, vector<224x1xf32>
    %65 = vector.broadcast %64 : vector<224x1xf32> to vector<224x32xf32>
    %66 = arith.mulf %63, %65 : vector<224x32xf32>
    %67 = arith.truncf %66 : vector<224x32xf32> to vector<224x32xbf16>
    %c0_11 = arith.constant 0 : index
    %c0_12 = arith.constant 0 : index
    %68 = vector.load %arg5[%c0_11, %c0_12] : memref<224x32xbf16, #tpu.memory_space<vmem>>, vector<224x32xbf16>
    tpu.vector_store %arg5[%c0_11, %c0_12], %67 {strides = array<i32>} : memref<224x32xbf16, #tpu.memory_space<vmem>>, vector<224x32xbf16>,
    return
  }
  func.func @transform_0(%arg0: i32) -> (i32, i32, i32, i32) {
    %c0_i32 = arith.constant 0 : i32
    %c0_i32_0 = arith.constant 0 : i32
    %c0_i32_1 = arith.constant 0 : i32
    %c0_i32_2 = arith.constant 0 : i32
    %c0_i32_3 = arith.constant 0 : i32
    return %c0_i32, %c0_i32_0, %c0_i32_1, %c0_i32_2 : i32, i32, i32, i32
  }
  func.func @transform_1(%arg0: i32) -> (i32, i32, i32) {
    %c0_i32 = arith.constant 0 : i32
    %c0_i32_0 = arith.constant 0 : i32
    %c0_i32_1 = arith.constant 0 : i32
    return %c0_i32, %c0_i32_0, %arg0 : i32, i32, i32
  }
  func.func @transform_2(%arg0: i32) -> (i32, i32) {
    %c0_i32 = arith.constant 0 : i32
    %c0_i32_0 = arith.constant 0 : i32
    return %c0_i32, %arg0 : i32, i32
  }
  func.func @transform_3(%arg0: i32) -> (i32, i32) {
    %c0_i32 = arith.constant 0 : i32
    %c0_i32_0 = arith.constant 0 : i32
    %c0_i32_1 = arith.constant 0 : i32
    return %c0_i32, %c0_i32_0 : i32, i32
  }
  func.func @transform_4(%arg0: i32) -> (i32, i32) {
    %c0_i32 = arith.constant 0 : i32
    %c0_i32_0 = arith.constant 0 : i32
    return %c0_i32, %arg0 : i32, i32
  }
}

</mosaic_0001>

<bundles_post_ra>
// kernel: tpu_custom_call.1
= control target key start
LH: loop header
LB: loop body
LE: loop exit
PB: predicated region body
PF: predicated region fallthrough
CT: control target
= control target key end

     0   :  { %v1874_v0 = vmov 0   ;;  %vm1342_vm0 = vcmask 257024   ;;  %s2928_s0 = inlined_call_operand.vmem [shape: bf16[15,3,16,1], index: 0, kind: input, shape index: {}]   ;;  %s2929_s3 = inlined_call_operand.vmem [shape: f32[224,1], index: 3, kind: input, shape index: {}]   ;;  %s2930_s1 = inlined_call_operand.vmem [shape: bf16[5,1,32], index: 1, kind: input, shape index: {}]   ;;  %s2931_s2 = inlined_call_operand.vmem [shape: f32[1,32], index: 2, kind: input, shape index: {}]   ;;  %s2932_s4 = inlined_call_operand.vmem [shape: bf16[224,32], index: 4, kind: output, shape index: {}]  }
   0x1   :  { %1663 = vset.pattern.permute.xlu1 %v1874_v0  ;;  %1652 = vset.pattern.permute.xlu0 %v1874_v0  ;;  %v1613_v1 = vld [vmem:[%s2928_s0 + $0x30] sm:$0xff]   ;;  %v1433_v2 = vld [vmem:[%s2928_s0] sm:$0xff]   ;;  %v1616_v3 = vld [vmem:[%s2928_s0 + $0x48] sm:$0xff]  }
   0x2   :  { %v1458_v4 = vunpack.c.l.bf16 %v1613_v1  ;;  %v1459_v5 = vunpack.c.h.bf16 %v1613_v1  ;;  %v1434_v6 = vunpack.c.l.bf16 %v1433_v2  ;;  %v1435_v7 = vunpack.c.h.bf16 %v1433_v2  ;;  %v1610_v8 = vld [vmem:[%s2928_s0 + $0x18] sm:$0xff]   ;;  %v1619_v14 = vld [vmem:[%s2928_s0 + $0x60] sm:$0xff]   ;;  %v1628_v23 = vld [vmem:[%s2928_s0 + $0xa8] sm:$0xff]  }
   0x3   :  { %v1622_v9 = vld [vmem:[%s2928_s0 + $0x78] sm:$0xff]   ;;  %v1470_v10 = vunpack.c.l.bf16 %v1616_v3  ;;  %v1471_v11 = vunpack.c.h.bf16 %v1616_v3  ;;  %v1446_v12 = vunpack.c.l.bf16 %v1610_v8  ;;  %v1447_v13 = vunpack.c.h.bf16 %v1610_v8  ;;  %v1625_v24 = vld [vmem:[%s2928_s0 + $0x90] sm:$0xff]   ;;  %v1631_v32 = vld [vmem:[%s2928_s0 + $0xc0] sm:$0xff]  }
   0x4   :  { %v1664_v15 = vpack.i.bf16 %v1459_v5, %v1458_v4  ;;  %v1653_v16 = vpack.i.bf16 %v1435_v7, %v1434_v6  ;;  %v1494_v17 = vunpack.c.l.bf16 %v1622_v9  ;;  %v1495_v18 = vunpack.c.h.bf16 %v1622_v9  ;;  %v1634_v31 = vld [vmem:[%s2928_s0 + $0xd8] sm:$0xff]   ;;  %v1640_v39 = vld [vmem:[%s2928_s0 + $0x108] sm:$0xff]   ;;  %v1637_v40 = vld [vmem:[%s2928_s0 + $0xf0] sm:$0xff]  }
   0x5   :  { %v1669_v19 = vpack.i.bf16 %v1471_v11, %v1470_v10  ;;  %v1658_v20 = vpack.i.bf16 %v1447_v13, %v1446_v12  ;;  %v1482_v21 = vunpack.c.l.bf16 %v1619_v14  ;;  %v1483_v22 = vunpack.c.h.bf16 %v1619_v14  ;;  %v1646_v47 = vld [vmem:[%s2928_s0 + $0x138] sm:$0xff]   ;;  %v1643_v48 = vld [vmem:[%s2928_s0 + $0x120] sm:$0xff]   ;;  %v1608_v56 = vld [vmem:[%s2928_s0 + $0x8] sm:$0xff]  }
   0x6   :  { %1665 = vperm.xlu1 %1663, %v1664_v15   ;;  %1654 = vperm.xlu0 %1652, %v1653_v16   ;;  %v1679_v25 = vpack.i.bf16 %v1495_v18, %v1494_v17  ;;  %v1518_v26 = vunpack.c.l.bf16 %v1628_v23  ;;  %v1519_v28 = vunpack.c.h.bf16 %v1628_v23  ;;  %v1506_v29 = vunpack.c.l.bf16 %v1625_v24  ;;  %v1611_v55 = vld [vmem:[%s2928_s0 + $0x20] sm:$0xff]   ;;  %v1617_v63 = vld [vmem:[%s2928_s0 + $0x50] sm:$0xff]   ;;  %v1614_v0 = vld [vmem:[%s2928_s0 + $0x38] sm:$0xff]  }
   0x7   :  { %v1674_v27 = vpack.i.bf16 %v1483_v22, %v1482_v21  ;;  %v1507_v30 = vunpack.c.h.bf16 %v1625_v24  ;;  %v1542_v33 = vunpack.c.l.bf16 %v1634_v31  ;;  %v1543_v34 = vunpack.c.h.bf16 %v1634_v31  ;;  %v1623_v7 = vld [vmem:[%s2928_s0 + $0x80] sm:$0xff]   ;;  %v1620_v8 = vld [vmem:[%s2928_s0 + $0x68] sm:$0xff]   ;;  %v1629_v15 = vld [vmem:[%s2928_s0 + $0xb0] sm:$0xff]  }
   0x8   :  { %v1689_v35 = vpack.i.bf16 %v1519_v28, %v1518_v26  ;;  %v1530_v37 = vunpack.c.l.bf16 %v1631_v32  ;;  %v1531_v38 = vunpack.c.h.bf16 %v1631_v32  ;;  %v1566_v42 = vunpack.c.l.bf16 %v1640_v39  ;;  %v1626_v16 = vld [vmem:[%s2928_s0 + $0x98] sm:$0xff]   ;;  %v1635_v23 = vld [vmem:[%s2928_s0 + $0xe0] sm:$0xff]   ;;  %v1632_v24 = vld [vmem:[%s2928_s0 + $0xc8] sm:$0xff]  }
   0x9   :  { %v1684_v36 = vpack.i.bf16 %v1507_v30, %v1506_v29  ;;  %v1699_v41 = vpack.i.bf16 %v1543_v34, %v1542_v33  ;;  %v1567_v44 = vunpack.c.h.bf16 %v1640_v39  ;;  %v1554_v45 = vunpack.c.l.bf16 %v1637_v40  ;;  %v1641_v31 = vld [vmem:[%s2928_s0 + $0x110] sm:$0xff]   ;;  %v1638_v32 = vld [vmem:[%s2928_s0 + $0xf8] sm:$0xff]   ;;  %v1647_v39 = vld [vmem:[%s2928_s0 + $0x140] sm:$0xff]  }
   0xa   :  { %1670 = vperm.xlu1 %1663, %v1669_v19   ;;  %1659 = vperm.xlu0 %1652, %v1658_v20   ;;  %v1694_v43 = vpack.i.bf16 %v1531_v38, %v1530_v37  ;;  %v1555_v46 = vunpack.c.h.bf16 %v1637_v40  ;;  %v1590_v49 = vunpack.c.l.bf16 %v1646_v47  ;;  %v1591_v50 = vunpack.c.h.bf16 %v1646_v47  ;;  %v1644_v40 = vld [vmem:[%s2928_s0 + $0x128] sm:$0xff]  }
   0xb   :  { %v1709_v51 = vpack.i.bf16 %v1567_v44, %v1566_v42  ;;  %v1578_v53 = vunpack.c.l.bf16 %v1643_v48  ;;  %v1579_v54 = vunpack.c.h.bf16 %v1643_v48  ;;  %v1450_v58 = vunpack.c.l.bf16 %v1611_v55  ;;  %v1612_v47 = vld [vmem:[%s2928_s0 + $0x28] sm:$0xff]   ;;  %v1609_v48 = vld [vmem:[%s2928_s0 + $0x10] sm:$0xff]  }
   0xc   :  { %v1704_v52 = vpack.i.bf16 %v1555_v46, %v1554_v45  ;;  %v1719_v57 = vpack.i.bf16 %v1591_v50, %v1590_v49  ;;  %v1451_v60 = vunpack.c.h.bf16 %v1611_v55  ;;  %v1438_v61 = vunpack.c.l.bf16 %v1608_v56  ;;  %v1618_v55 = vld [vmem:[%s2928_s0 + $0x58] sm:$0xff]  }
   0xd   :  { %v1714_v59 = vpack.i.bf16 %v1579_v54, %v1578_v53  ;;  %v1439_v62 = vunpack.c.h.bf16 %v1608_v56  ;;  %v1474_v1 = vunpack.c.l.bf16 %v1617_v63  ;;  %v1475_v2 = vunpack.c.h.bf16 %v1617_v63  ;;  %v1615_v56 = vld [vmem:[%s2928_s0 + $0x40] sm:$0xff]   ;;  %v1624_v63 = vld [vmem:[%s2928_s0 + $0x88] sm:$0xff]  }
   0xe   :  { %1680 = vperm.xlu1 %1663, %v1679_v25   ;;  %1675 = vperm.xlu0 %1652, %v1674_v27   ;;  %v1729_v3 = vpack.i.bf16 %v1451_v60, %v1450_v58  ;;  %v1462_v5 = vunpack.c.l.bf16 %v1614_v0  ;;  %v1463_v6 = vunpack.c.h.bf16 %v1614_v0  ;;  %v1498_v10 = vunpack.c.l.bf16 %v1623_v7  ;;  %v1621_v0 = vld [vmem:[%s2928_s0 + $0x70] sm:$0xff]  }
   0xf   :  { %v1724_v4 = vpack.i.bf16 %v1439_v62, %v1438_v61  ;;  %v1739_v9 = vpack.i.bf16 %v1475_v2, %v1474_v1  ;;  %v1499_v12 = vunpack.c.h.bf16 %v1623_v7  ;;  %v1486_v13 = vunpack.c.l.bf16 %v1620_v8  ;;  %v1630_v7 = vld [vmem:[%s2928_s0 + $0xb8] sm:$0xff]  }
  0x10   :  { %v1734_v11 = vpack.i.bf16 %v1463_v6, %v1462_v5  ;;  %v1487_v14 = vunpack.c.h.bf16 %v1620_v8  ;;  %v1522_v17 = vunpack.c.l.bf16 %v1629_v15  ;;  %v1523_v18 = vunpack.c.h.bf16 %v1629_v15  ;;  %v1627_v8 = vld [vmem:[%s2928_s0 + $0xa0] sm:$0xff]   ;;  %v1636_v15 = vld [vmem:[%s2928_s0 + $0xe8] sm:$0xff]  }
  0x11   :  { %v1749_v19 = vpack.i.bf16 %v1499_v12, %v1498_v10  ;;  %v1510_v21 = vunpack.c.l.bf16 %v1626_v16  ;;  %v1511_v22 = vunpack.c.h.bf16 %v1626_v16  ;;  %v1546_v26 = vunpack.c.l.bf16 %v1635_v23  ;;  %v1633_v16 = vld [vmem:[%s2928_s0 + $0xd0] sm:$0xff]  }
  0x12   :  { %1690 = vperm.xlu1 %1663, %v1689_v35   ;;  %1685 = vperm.xlu0 %1652, %v1684_v36   ;;  %v1744_v20 = vpack.i.bf16 %v1487_v14, %v1486_v13  ;;  %v1759_v25 = vpack.i.bf16 %v1523_v18, %v1522_v17  ;;  %v1547_v28 = vunpack.c.h.bf16 %v1635_v23  ;;  %v1534_v29 = vunpack.c.l.bf16 %v1632_v24  ;;  %v1642_v23 = vld [vmem:[%s2928_s0 + $0x118] sm:$0xff]  }
  0x13   :  { %v1754_v27 = vpack.i.bf16 %v1511_v22, %v1510_v21  ;;  %v1535_v30 = vunpack.c.h.bf16 %v1632_v24  ;;  %v1570_v33 = vunpack.c.l.bf16 %v1641_v31  ;;  %v1571_v34 = vunpack.c.h.bf16 %v1641_v31  ;;  %v1639_v24 = vld [vmem:[%s2928_s0 + $0x100] sm:$0xff]   ;;  %v1648_v31 = vld [vmem:[%s2928_s0 + $0x148] sm:$0xff]  }
  0x14   :  { %v1769_v35 = vpack.i.bf16 %v1547_v28, %v1546_v26  ;;  %v1558_v37 = vunpack.c.l.bf16 %v1638_v32  ;;  %v1559_v38 = vunpack.c.h.bf16 %v1638_v32  ;;  %v1594_v42 = vunpack.c.l.bf16 %v1647_v39  ;;  %v1645_v32 = vld [vmem:[%s2928_s0 + $0x130] sm:$0xff]  }
  0x15   :  { %v1764_v36 = vpack.i.bf16 %v1535_v30, %v1534_v29  ;;  %v1595_v44 = vunpack.c.h.bf16 %v1647_v39  ;;  %v1582_v45 = vunpack.c.l.bf16 %v1644_v40  ;;  %v1583_v46 = vunpack.c.h.bf16 %v1644_v40  ;;  %v1650_v39 = vld [vmem:[%s2928_s0 + $0x158] sm:$0xff]   ;;  %v1649_v40 = vld [vmem:[%s2928_s0 + $0x150] sm:$0xff]  }
  0x16   :  { %1700 = vperm.xlu1 %1663, %v1699_v41   ;;  %1695 = vperm.xlu0 %1652, %v1694_v43   ;;  %v1779_v41 = vpack.i.bf16 %v1571_v34, %v1570_v33  ;;  %v1774_v43 = vpack.i.bf16 %v1559_v38, %v1558_v37  ;;  %v1454_v49 = vunpack.c.l.bf16 %v1612_v47  ;;  %v1455_v50 = vunpack.c.h.bf16 %v1612_v47 }
  0x17   :  { %v1442_v53 = vunpack.c.l.bf16 %v1609_v48  ;;  %v1443_v54 = vunpack.c.h.bf16 %v1609_v48  ;;  %v1478_v58 = vunpack.c.l.bf16 %v1618_v55  ;;  %v1479_v60 = vunpack.c.h.bf16 %v1618_v55  ;;  %v1041_v55 = vld [vmem:[%s2929_s3 + $0x38] sm:$0xff] }
  0x18   :  { %v1466_v61 = vunpack.c.l.bf16 %v1615_v56  ;;  %v1467_v62 = vunpack.c.h.bf16 %v1615_v56  ;;  %v1502_v1 = vunpack.c.l.bf16 %v1624_v63  ;;  %v1503_v2 = vunpack.c.h.bf16 %v1624_v63  ;;  %v1040_v56 = vld [vmem:[%s2929_s3 + $0x30] sm:$0xff]  ;;  %v1049_v63 = vld [vmem:[%s2929_s3 + $0x78] sm:$0xff] }
  0x19   :  { %v1490_v5 = vunpack.c.l.bf16 %v1621_v0  ;;  %v1491_v6 = vunpack.c.h.bf16 %v1621_v0  ;;  %v1526_v10 = vunpack.c.l.bf16 %v1630_v7  ;;  %v1527_v12 = vunpack.c.h.bf16 %v1630_v7  ;;  %v1048_v0 = vld [vmem:[%s2929_s3 + $0x70] sm:$0xff] }
  0x1a   :  { %1710 = vperm.xlu1 %1663, %v1709_v51   ;;  %1705 = vperm.xlu0 %1652, %v1704_v52   ;;  %v1789_v51 = vpack.i.bf16 %v1595_v44, %v1594_v42  ;;  %v1784_v52 = vpack.i.bf16 %v1583_v46, %v1582_v45  ;;  %v1514_v13 = vunpack.c.l.bf16 %v1627_v8  ;;  %v1515_v14 = vunpack.c.h.bf16 %v1627_v8 }
  0x1b   :  { %v1550_v17 = vunpack.c.l.bf16 %v1636_v15  ;;  %v1551_v18 = vunpack.c.h.bf16 %v1636_v15  ;;  %v1538_v21 = vunpack.c.l.bf16 %v1633_v16  ;;  %v1539_v22 = vunpack.c.h.bf16 %v1633_v16  ;;  %v105_v15 = vld [vmem:[%s2930_s1] sm:$0x1]  ;;  %v108_v16 = vld [vmem:[%s2930_s1 + $0x3] sm:$0x1] }
  0x1c   :  { %v1574_v26 = vunpack.c.l.bf16 %v1642_v23  ;;  %v1575_v28 = vunpack.c.h.bf16 %v1642_v23  ;;  %v1562_v29 = vunpack.c.l.bf16 %v1639_v24  ;;  %v1563_v30 = vunpack.c.h.bf16 %v1639_v24 }
  0x1d   :  { %v1598_v33 = vunpack.c.l.bf16 %v1648_v31  ;;  %v1599_v34 = vunpack.c.h.bf16 %v1648_v31  ;;  %v1586_v37 = vunpack.c.l.bf16 %v1645_v32  ;;  %v1587_v38 = vunpack.c.h.bf16 %v1645_v32 }
  0x1e   :  { %1720 = vperm.xlu1 %1663, %v1719_v57   ;;  %1715 = vperm.xlu0 %1652, %v1714_v59   ;;  %v1799_v57 = vpack.i.bf16 %v1455_v50, %v1454_v49  ;;  %v1794_v59 = vpack.i.bf16 %v1443_v54, %v1442_v53  ;;  %v1606_v42 = vunpack.c.l.bf16 %v1650_v39  ;;  %v1607_v44 = vunpack.c.h.bf16 %v1650_v39  ;;  %v1035_v49 = vld [vmem:[%s2929_s3 + $0x8] sm:$0xff]  ;;  %v1034_v50 = vld [vmem:[%s2929_s3] sm:$0xff] }
  0x1f   :  { %v1602_v45 = vunpack.c.l.bf16 %v1649_v40  ;;  %v1603_v46 = vunpack.c.h.bf16 %v1649_v40  ;;  %v1039_v53 = vld [vmem:[%s2929_s3 + $0x28] sm:$0xff]  ;;  %v1038_v54 = vld [vmem:[%s2929_s3 + $0x20] sm:$0xff]  ;;  %v279_v7 = vlaneseq }
  0x20   :  { %v1869_v47 = vpack.i.bf16 %v1607_v44, %v1606_v42 }
  0x21   :  { %v1864_v48 = vpack.i.bf16 %v1603_v46, %v1602_v45 }
  0x22   :  { %1730 = vperm.xlu1 %1663, %v1729_v3   ;;  %1725 = vperm.xlu0 %1652, %v1724_v4   ;;  %v1809_v3 = vpack.i.bf16 %v1479_v60, %v1478_v58  ;;  %v1804_v4 = vpack.i.bf16 %v1467_v62, %v1466_v61  ;;  %v1042_v58 = vld [vmem:[%s2929_s3 + $0x40] sm:$0xff]  ;;  %v1044_v60 = vld [vmem:[%s2929_s3 + $0x50] sm:$0xff]  ;;  %v1047_v61 = vld [vmem:[%s2929_s3 + $0x68] sm:$0xff] }
  0x23   :  { %v1046_v62 = vld [vmem:[%s2929_s3 + $0x60] sm:$0xff] }
  0x26   :  { %1740 = vperm.xlu1 %1663, %v1739_v9   ;;  %1735 = vperm.xlu0 %1652, %v1734_v11   ;;  %v1819_v9 = vpack.i.bf16 %v1503_v2, %v1502_v1  ;;  %v1814_v11 = vpack.i.bf16 %v1491_v6, %v1490_v5  ;;  %v1051_v1 = vld [vmem:[%s2929_s3 + $0x88] sm:$0xff]  ;;  %v1050_v2 = vld [vmem:[%s2929_s3 + $0x80] sm:$0xff] }
  0x27   :  { %v1055_v5 = vld [vmem:[%s2929_s3 + $0xa8] sm:$0xff]  ;;  %v1054_v6 = vld [vmem:[%s2929_s3 + $0xa0] sm:$0xff] }
  0x2a   :  { %1750 = vperm.xlu1 %1663, %v1749_v19   ;;  %1745 = vperm.xlu0 %1652, %v1744_v20   ;;  %v1829_v19 = vpack.i.bf16 %v1527_v12, %v1526_v10  ;;  %v1824_v20 = vpack.i.bf16 %v1515_v14, %v1514_v13  ;;  %v1057_v10 = vld [vmem:[%s2929_s3 + $0xb8] sm:$0xff]  ;;  %v280_v12 = vshrl.u32 %v279_v7, 7 }
  0x2e   :  { %1760 = vperm.xlu1 %1663, %v1759_v25   ;;  %1755 = vperm.xlu0 %1652, %v1754_v27   ;;  %v1839_v25 = vpack.i.bf16 %v1551_v18, %v1550_v17  ;;  %v1834_v27 = vpack.i.bf16 %v1539_v22, %v1538_v21  ;;  %v1059_v17 = vld [vmem:[%s2929_s3 + $0xc8] sm:$0xff]  ;;  %v1058_v18 = vld [vmem:[%s2929_s3 + $0xc0] sm:$0xff]  ;;  %v281_v21 = vsub.s32 0, %v280_v12  ;;  %v799_v22 = vunpack.c.l.bf16 %v108_v16 }
  0x32   :  { %1770 = vperm.xlu1 %1663, %v1769_v35   ;;  %1765 = vperm.xlu0 %1652, %v1764_v36   ;;  %v1849_v35 = vpack.i.bf16 %v1575_v28, %v1574_v26  ;;  %v1844_v36 = vpack.i.bf16 %v1563_v30, %v1562_v29  ;;  %v107_v26 = vld [vmem:[%s2930_s1 + $0x2] sm:$0x1]  ;;  %v1060_v28 = vld [vmem:[%s2929_s3 + $0xd0] sm:$0xff] }
  0x33   :  { %v596_v31 = vunpack.c.l.bf16 %v107_v26 }
  0x35   :  { %v2139_v44 = vrot.slane %v596_v31, %v281_v21 }
  0x36   :  { %1780 = vperm.xlu1 %1663, %v1779_v41   ;;  %1775 = vperm.xlu0 %1652, %v1774_v43   ;;  %v1859_v41 = vpack.i.bf16 %v1599_v34, %v1598_v33  ;;  %v1854_v43 = vpack.i.bf16 %v1587_v38, %v1586_v37  ;;  %v2133_v33 = vrot.slane %v799_v22, %v281_v21 }
  0x38   :  { %2948 = vst [vmem:[#allocation2_spill] sm:$0xff] %v2133_v33 }
  0x3a   :  { %1790 = vperm.xlu1 %1663, %v1789_v51   ;;  %1785 = vperm.xlu0 %1652, %v1784_v52   ;;  %v1037_v51 = vld [vmem:[%s2929_s3 + $0x18] sm:$0xff]  ;;  %v1036_v52 = vld [vmem:[%s2929_s3 + $0x10] sm:$0xff] }
  0x3e   :  { %1800 = vperm.xlu1 %1663, %v1799_v57   ;;  %1795 = vperm.xlu0 %1652, %v1794_v59   ;;  %v1043_v57 = vld [vmem:[%s2929_s3 + $0x48] sm:$0xff]  ;;  %v1045_v59 = vld [vmem:[%s2929_s3 + $0x58] sm:$0xff] }
  0x42   :  { %1810 = vperm.xlu1 %1663, %v1809_v3   ;;  %1805 = vperm.xlu0 %1652, %v1804_v4   ;;  %v1053_v3 = vld [vmem:[%s2929_s3 + $0x98] sm:$0xff]  ;;  %v1052_v4 = vld [vmem:[%s2929_s3 + $0x90] sm:$0xff] }
  0x46   :  { %1820 = vperm.xlu1 %1663, %v1819_v9   ;;  %1815 = vperm.xlu0 %1652, %v1814_v11   ;;  %v1056_v11 = vld [vmem:[%s2929_s3 + $0xb0] sm:$0xff] }
  0x4a   :  { %1830 = vperm.xlu1 %1663, %v1829_v19   ;;  %1825 = vperm.xlu0 %1652, %v1824_v20   ;;  %v106_v19 = vld [vmem:[%s2930_s1 + $0x1] sm:$0x1]  ;;  %v138_v20 = vunpack.c.l.bf16 %v105_v15 }
  0x4b   :  { %v367_v29 = vunpack.c.l.bf16 %v106_v19 }
  0x4c   :  { %v2131_v32 = vrot.slane %v138_v20, %v281_v21 }
  0x4d   :  { %v2135_v42 = vrot.slane %v367_v29, %v281_v21 }
  0x4e   :  { %1840 = vperm.xlu1 %1663, %v1839_v25   ;;  %1835 = vperm.xlu0 %1652, %v1834_v27   ;;  %v109_v25 = vld [vmem:[%s2930_s1 + $0x4] sm:$0x1]  ;;  %v1061_v27 = vld [vmem:[%s2929_s3 + $0xd8] sm:$0xff] }
  0x4f   :  { %v872_v30 = vunpack.c.l.bf16 %v109_v25 }
  0x52   :  { %1850 = vperm.xlu1 %1663, %v1849_v35   ;;  %1845 = vperm.xlu0 %1652, %v1844_v36  }
  0x56   :  { %1860 = vperm.xlu1 %1663, %v1859_v41   ;;  %1855 = vperm.xlu0 %1652, %v1854_v43   ;;  %v2137_v43 = vrot.slane %v872_v30, %v281_v21 }
  0x58   :  { %2949 = vst [vmem:[#allocation3_spill] sm:$0xff] %v2137_v43 }
  0x5a   :  { %1870 = vperm.xlu1 %1663, %v1869_v47   ;;  %1865 = vperm.xlu0 %1652, %v1864_v48  }
  0x5e   :  { %1069 = vperm.xlu1 %1663, %v1035_v49   ;;  %1064 = vperm.xlu0 %1652, %v1034_v50  }
  0x62   :  { %1079 = vperm.xlu1 %1663, %v1037_v51   ;;  %1074 = vperm.xlu0 %1652, %v1036_v52  }
  0x66   :  { %1089 = vperm.xlu1 %1663, %v1039_v53   ;;  %1084 = vperm.xlu0 %1652, %v1038_v54  }
  0x6a   :  { %1099 = vperm.xlu1 %1663, %v1041_v55   ;;  %1094 = vperm.xlu0 %1652, %v1040_v56  }
  0x6e   :  { %1109 = vperm.xlu1 %1663, %v1043_v57   ;;  %1104 = vperm.xlu0 %1652, %v1042_v58  }
  0x72   :  { %1119 = vperm.xlu1 %1663, %v1045_v59   ;;  %1114 = vperm.xlu0 %1652, %v1044_v60  }
  0x76   :  { %1129 = vperm.xlu1 %1663, %v1047_v61   ;;  %1124 = vperm.xlu0 %1652, %v1046_v62  }
  0x7a   :  { %1139 = vperm.xlu1 %1663, %v1049_v63   ;;  %1134 = vperm.xlu0 %1652, %v1048_v0  }
  0x7e   :  { %1149 = vperm.xlu1 %1663, %v1051_v1   ;;  %1144 = vperm.xlu0 %1652, %v1050_v2  }
  0x82   :  { %1159 = vperm.xlu1 %1663, %v1053_v3   ;;  %1154 = vperm.xlu0 %1652, %v1052_v4  }
  0x85   :  { %v1666_v8 = vpop.permute.xlu1 %1665  ;;  %v1655_v9 = vpop.permute.xlu0 %1654 }
  0x86   :  { %1169 = vperm.xlu1 %1663, %v1055_v5   ;;  %1164 = vperm.xlu0 %1652, %v1054_v6   ;;  %v1668_v34 = vunpack.i.h.bf16 %v1666_v8  ;;  %v1667_v37 = vunpack.i.l.bf16 %v1666_v8  ;;  %v1657_v38 = vunpack.i.h.bf16 %v1655_v9  ;;  %v1656_v39 = vunpack.i.l.bf16 %v1655_v9 }
  0x88   :  { %v2142_v45 = vmul.f32 %v1668_v34, %v2131_v32  ;;  %v2145_v46 = vmul.f32 %v1668_v34, %v2133_v33  ;;  %v2148_v51 = vmul.f32 %v1667_v37, %v2131_v32  ;;  %v2151_v52 = vmul.f32 %v1667_v37, %v2133_v33 }
  0x89   :  { %v1671_v13 = vpop.permute.xlu1 %1670  ;;  %v1660_v14 = vpop.permute.xlu0 %1659  ;;  %v2154_v53 = vmul.f32 %v1657_v38, %v2131_v32  ;;  %v2157_v55 = vmul.f32 %v1656_v39, %v2131_v32 }
  0x8a   :  { %1179 = vperm.xlu1 %1663, %v1057_v10   ;;  %1174 = vperm.xlu0 %1652, %v1056_v11   ;;  %v1673_v40 = vunpack.i.h.bf16 %v1671_v13  ;;  %v1672_v41 = vunpack.i.l.bf16 %v1671_v13  ;;  %v1662_v47 = vunpack.i.h.bf16 %v1660_v14  ;;  %v1661_v48 = vunpack.i.l.bf16 %v1660_v14 }
  0x8c   :  { %v2160_v56 = vmul.f32 %v1673_v40, %v2131_v32  ;;  %v2163_v57 = vmul.f32 %v1673_v40, %v2133_v33  ;;  %v2166_v59 = vmul.f32 %v1672_v41, %v2131_v32  ;;  %v2169_v60 = vmul.f32 %v1672_v41, %v2133_v33 }
  0x8d   :  { %v1681_v23 = vpop.permute.xlu1 %1680  ;;  %v1676_v24 = vpop.permute.xlu0 %1675  ;;  %v2172_v63 = vmul.f32 %v1662_v47, %v2131_v32  ;;  %v2175_v0 = vmul.f32 %v1662_v47, %v2133_v33  ;;  %v2178_v1 = vmul.f32 %v1661_v48, %v2131_v32  ;;  %v2181_v5 = vmul.f32 %v1661_v48, %v2133_v33 }
  0x8e   :  { %1189 = vperm.xlu1 %1663, %v1059_v17   ;;  %1184 = vperm.xlu0 %1652, %v1058_v18   ;;  %v1683_v54 = vunpack.i.h.bf16 %v1681_v23  ;;  %v1682_v58 = vunpack.i.l.bf16 %v1681_v23  ;;  %v1678_v61 = vunpack.i.h.bf16 %v1676_v24  ;;  %v1677_v62 = vunpack.i.l.bf16 %v1676_v24 }
  0x90   :  { %v2184_v6 = vmul.f32 %v1683_v54, %v2131_v32  ;;  %v2187_v7 = vmul.f32 %v1683_v54, %v2133_v33  ;;  %v2190_v9 = vmul.f32 %v1682_v58, %v2131_v32  ;;  %v2193_v10 = vmul.f32 %v1682_v58, %v2133_v33 }
  0x91   :  { %v1691_v35 = vpop.permute.xlu1 %1690  ;;  %v1686_v36 = vpop.permute.xlu0 %1685  ;;  %v2196_v13 = vmul.f32 %v1678_v61, %v2131_v32  ;;  %v2199_v14 = vmul.f32 %v1678_v61, %v2133_v33  ;;  %v2202_v15 = vmul.f32 %v1677_v62, %v2131_v32  ;;  %v2205_v17 = vmul.f32 %v1677_v62, %v2133_v33 }
  0x92   :  { %1199 = vperm.xlu1 %1663, %v1061_v27   ;;  %1194 = vperm.xlu0 %1652, %v1060_v28   ;;  %v1693_v2 = vunpack.i.h.bf16 %v1691_v35  ;;  %2950 = vst [vmem:[#allocation4_spill] sm:$0xff] %v2187_v7  ;;  %v1692_v8 = vunpack.i.l.bf16 %v1691_v35  ;;  %v1688_v11 = vunpack.i.h.bf16 %v1686_v36  ;;  %v1687_v12 = vunpack.i.l.bf16 %v1686_v36 }
  0x94   :  { %v2208_v18 = vmul.f32 %v1693_v2, %v2131_v32  ;;  %v2211_v23 = vmul.f32 %v1693_v2, %v2133_v33  ;;  %v2214_v24 = vmul.f32 %v1692_v8, %v2131_v32  ;;  %v2217_v25 = vmul.f32 %v1692_v8, %v2133_v33 }
  0x95   :  { %v1701_v49 = vpop.permute.xlu1 %1700  ;;  %v1696_v50 = vpop.permute.xlu0 %1695  ;;  %v2220_v27 = vmul.f32 %v1688_v11, %v2131_v32  ;;  %v2223_v28 = vmul.f32 %v1688_v11, %v2133_v33  ;;  %v2226_v29 = vmul.f32 %v1687_v12, %v2131_v32  ;;  %v2229_v31 = vmul.f32 %v1687_v12, %v2133_v33 }
  0x96   :  { %v1703_v16 = vunpack.i.h.bf16 %v1701_v49  ;;  %v1702_v19 = vunpack.i.l.bf16 %v1701_v49  ;;  %v1698_v20 = vunpack.i.h.bf16 %v1696_v50  ;;  %2951 = vst [vmem:[#allocation5_spill] sm:$0xff] %v2211_v23  ;;  %2952 = vst [vmem:[#allocation6_spill] sm:$0xff] %v2217_v25  ;;  %v1697_v26 = vunpack.i.l.bf16 %v1696_v50 }
  0x98   :  { %v2232_v34 = vmul.f32 %v1703_v16, %v2131_v32  ;;  %v2235_v35 = vmul.f32 %v1703_v16, %v2133_v33  ;;  %v2238_v37 = vmul.f32 %v1702_v19, %v2131_v32  ;;  %v2241_v38 = vmul.f32 %v1702_v19, %v2133_v33 }
  0x99   :  { %v1711_v3 = vpop.permute.xlu1 %1710  ;;  %v1706_v4 = vpop.permute.xlu0 %1705  ;;  %v2244_v39 = vmul.f32 %v1698_v20, %v2131_v32  ;;  %v2247_v48 = vmul.f32 %v1698_v20, %v2133_v33  ;;  %v2250_v49 = vmul.f32 %v1697_v26, %v2131_v32  ;;  %v2253_v50 = vmul.f32 %v1697_v26, %v2133_v33 }
  0x9a   :  { %v1713_v30 = vunpack.i.h.bf16 %v1711_v3  ;;  %2953 = vst [vmem:[#allocation7_spill] sm:$0xff] %v2235_v35  ;;  %v1712_v36 = vunpack.i.l.bf16 %v1711_v3  ;;  %2954 = vst [vmem:[#allocation8_spill] sm:$0xff] %v2241_v38  ;;  %v1708_v40 = vunpack.i.h.bf16 %v1706_v4  ;;  %v1707_v54 = vunpack.i.l.bf16 %v1706_v4 }
  0x9b   :  { %2955 = vst [vmem:[#allocation9_spill] sm:$0xff] %v2247_v48  ;;  %2956 = vst [vmem:[#allocation10_spill] sm:$0xff] %v2253_v50 }
  0x9c   :  { %v2256_v58 = vmul.f32 %v1713_v30, %v2131_v32  ;;  %v2259_v3 = vmul.f32 %v1713_v30, %v2133_v33  ;;  %v2262_v8 = vmul.f32 %v1712_v36, %v2131_v32  ;;  %v2265_v11 = vmul.f32 %v1712_v36, %v2133_v33 }
  0x9d   :  { %v1721_v21 = vpop.permute.xlu1 %1720  ;;  %v1716_v22 = vpop.permute.xlu0 %1715  ;;  %v2268_v16 = vmul.f32 %v1708_v40, %v2131_v32  ;;  %v2274_v30 = vmul.f32 %v1707_v54, %v2131_v32 }
  0x9e   :  { %v1723_v61 = vunpack.i.h.bf16 %v1721_v21  ;;  %2957 = vst [vmem:[#allocation11_spill] sm:$0xff] %v2259_v3  ;;  %2958 = vst [vmem:[#allocation12_spill] sm:$0xff] %v2265_v11  ;;  %v1722_v12 = vunpack.i.l.bf16 %v1721_v21  ;;  %v1718_v4 = vunpack.i.h.bf16 %v1716_v22  ;;  %v2277_v3 = vmul.f32 %v1707_v54, %v2133_v33 }
  0x9f   :  { %v1717_v36 = vunpack.i.l.bf16 %v1716_v22 }
  0xa0   :  { %2960 = vst [vmem:[#allocation14_spill] sm:$0xff] %v2277_v3  ;;  %v2280_v21 = vmul.f32 %v1723_v61, %v2131_v32  ;;  %v2283_v11 = vmul.f32 %v1723_v61, %v2133_v33  ;;  %v2294_v22 = vmul.f32 %v1718_v4, %v2131_v32  ;;  %v2297_v3 = vmul.f32 %v1718_v4, %v2133_v33 }
  0xa1   :  { %v1731_v41 = vpop.permute.xlu1 %1730  ;;  %v1726_v47 = vpop.permute.xlu0 %1725  ;;  %v2302_v50 = vmul.f32 %v1717_v36, %v2131_v32 }
  0xa2   :  { %v1733_v62 = vunpack.i.h.bf16 %v1731_v41  ;;  %v1732_v2 = vunpack.i.l.bf16 %v1731_v41  ;;  %v1728_v19 = vunpack.i.h.bf16 %v1726_v47  ;;  %v1727_v20 = vunpack.i.l.bf16 %v1726_v47  ;;  %2961 = vst [vmem:[#allocation15_spill] sm:$0xff] %v2283_v11  ;;  %2963 = vst [vmem:[#allocation17_spill] sm:$0xff] %v2297_v3 }
  0xa3   :  { %v2271_v41 = vmul.f32 %v1708_v40, %v2133_v33  ;;  %v2288_v40 = vmul.f32 %v1722_v12, %v2131_v32 }
  0xa4   :  { %v515_v47 = vmul.f32 %v1733_v62, %v2135_v42  ;;  %v514_v38 = vmul.f32 %v1732_v2, %v2135_v42  ;;  %v513_v61 = vmul.f32 %v1728_v19, %v2135_v42  ;;  %v512_v11 = vmul.f32 %v1727_v20, %v2135_v42 }
  0xa5   :  { %v1741_v26 = vpop.permute.xlu1 %1740  ;;  %v1736_v35 = vpop.permute.xlu0 %1735  ;;  %2959 = vst [vmem:[#allocation13_spill] sm:$0xff] %v2271_v41  ;;  %v2291_v41 = vmul.f32 %v1722_v12, %v2133_v33  ;;  %v2305_v12 = vmul.f32 %v1717_v36, %v2133_v33  ;;  %v2308_v7 = vmul.f32 %v1733_v62, %v2137_v43  ;;  %v2317_v20 = vmul.f32 %v1732_v2, %v2137_v43 }
  0xa6   :  { %v1743_v23 = vunpack.i.h.bf16 %v1741_v26  ;;  %v1742_v54 = vunpack.i.l.bf16 %v1741_v26  ;;  %v1737_v26 = vunpack.i.l.bf16 %v1736_v35  ;;  %v2311_v4 = vadd.f32 %v514_v38, %v2178_v1 }
  0xa7   :  { %2962 = vst [vmem:[#allocation16_spill] sm:$0xff] %v2291_v41  ;;  %2964 = vst [vmem:[#allocation18_spill] sm:$0xff] %v2305_v12  ;;  %v1738_v41 = vunpack.i.h.bf16 %v1736_v35  ;;  %v2314_v19 = vadd.f32 %v515_v47, %v2172_v63  ;;  %v2322_v35 = vadd.f32 %v512_v11, %v2157_v55  ;;  %v2325_v62 = vadd.f32 %v513_v61, %v2154_v53 }
  0xa8   :  { %2965 = vst [vmem:[#allocation19_spill] sm:$0xff] %v2308_v7  ;;  %2966 = vst [vmem:[#allocation20_spill] sm:$0xff] %v2317_v20  ;;  %v519_v32 = vmul.f32 %v1743_v23, %v2135_v42  ;;  %v518_v3 = vmul.f32 %v1742_v54, %v2135_v42  ;;  %v2330_v2 = vmul.f32 %v1743_v23, %v2137_v43 }
  0xa9   :  { %v1751_v25 = vpop.permute.xlu1 %1750  ;;  %v1746_v48 = vpop.permute.xlu0 %1745  ;;  %v2333_v47 = vmul.f32 %v1742_v54, %v2137_v43  ;;  %v517_v20 = vmul.f32 %v1738_v41, %v2135_v42  ;;  %v2338_v55 = vmul.f32 %v1738_v41, %v2137_v43  ;;  %v2341_v53 = vmul.f32 %v1737_v26, %v2137_v43 }
  0xaa   :  { %v1753_v36 = vunpack.i.h.bf16 %v1751_v25  ;;  %v1752_v33 = vunpack.i.l.bf16 %v1751_v25  ;;  %v1748_v1 = vunpack.i.h.bf16 %v1746_v48  ;;  %v1747_v38 = vunpack.i.l.bf16 %v1746_v48  ;;  %2967 = vst [vmem:[#allocation21_spill] sm:$0xff] %v2330_v2 }
  0xab   :  { %2968 = vst [vmem:[#allocation22_spill] sm:$0xff] %v2333_v47  ;;  %v516_v25 = vmul.f32 %v1737_v26, %v2135_v42  ;;  %2969 = vst [vmem:[#allocation23_spill] sm:$0xff] %v2338_v55  ;;  %v2344_v61 = vadd.f32 %v519_v32, %v2160_v56  ;;  %v2347_v23 = vadd.f32 %v518_v3, %v2166_v59 }
  0xac   :  { %2970 = vst [vmem:[#allocation24_spill] sm:$0xff] %v2341_v53  ;;  %v523_v54 = vmul.f32 %v1753_v36, %v2135_v42  ;;  %v522_v47 = vmul.f32 %v1752_v33, %v2135_v42  ;;  %v521_v2 = vmul.f32 %v1748_v1, %v2135_v42  ;;  %v520_v41 = vmul.f32 %v1747_v38, %v2135_v42 }
  0xad   :  { %v1761_v7 = vpop.permute.xlu1 %1760  ;;  %v2327_v63 = vpop.permute.xlu0 %1755  ;;  %v2360_v56 = vadd.f32 %v517_v20, %v2142_v45  ;;  %v2363_v59 = vadd.f32 %v516_v25, %v2148_v51  ;;  %v2366_v3 = vmul.f32 %v1753_v36, %v2137_v43  ;;  %v2369_v32 = vmul.f32 %v1752_v33, %v2137_v43 }
  0xae   :  { %v1763_v48 = vunpack.i.h.bf16 %v1761_v7  ;;  %v1762_v11 = vunpack.i.l.bf16 %v1761_v7  ;;  %v2372_v55 = vmul.f32 %v1748_v1, %v2137_v43  ;;  %v2375_v26 = vmul.f32 %v1747_v38, %v2137_v43 }
  0xaf   :  { %2972 = vst [vmem:[#allocation26_spill] sm:$0xff] %v2366_v3  ;;  %2973 = vst [vmem:[#allocation27_spill] sm:$0xff] %v2369_v32  ;;  %v2380_v20 = vadd.f32 %v523_v54, %v2184_v6  ;;  %v2383_v51 = vadd.f32 %v522_v47, %v2190_v9  ;;  %v2388_v1 = vadd.f32 %v520_v41, %v2202_v15  ;;  %v2976_v25 = vunpack.i.h.bf16 %v2327_v63 }
  0xb0   :  { %2974 = vst [vmem:[#allocation28_spill] sm:$0xff] %v2372_v55  ;;  %2975 = vst [vmem:[#allocation29_spill] sm:$0xff] %v2375_v26  ;;  %v527_v12 = vmul.f32 %v1763_v48, %v2135_v42  ;;  %v526_v45 = vmul.f32 %v1762_v11, %v2135_v42  ;;  %v2391_v38 = vadd.f32 %v521_v2, %v2196_v13  ;;  %v2977_v6 = vunpack.i.l.bf16 %v2327_v63 }
  0xb1   :  { %v2355_v53 = vpop.permute.xlu1 %1770  ;;  %v2357_v7 = vpop.permute.xlu0 %1765  ;;  %v525_v32 = vmul.f32 %v2976_v25, %v2135_v42  ;;  %v2404_v33 = vmul.f32 %v1763_v48, %v2137_v43  ;;  %v2407_v15 = vmul.f32 %v1762_v11, %v2137_v43 }
  0xb2   :  { %2971 = vst [vmem:[#allocation25_spill] sm:$0xff] %v2357_v7  ;;  %v524_v54 = vmul.f32 %v2977_v6, %v2135_v42  ;;  %v2412_v41 = vadd.f32 %v527_v12, %v2208_v18  ;;  %v2415_v25 = vadd.f32 %v526_v45, %v2214_v24  ;;  %v2982_v48 = vunpack.i.h.bf16 %v2355_v53 }
  0xb3   :  { %2980 = vst [vmem:[#allocation32_spill] sm:$0xff] %v2404_v33  ;;  %2981 = vst [vmem:[#allocation33_spill] sm:$0xff] %v2407_v15  ;;  %v2983_v11 = vunpack.i.l.bf16 %v2355_v53  ;;  %v2435_v36 = vadd.f32 %v525_v32, %v2220_v27  ;;  %v2987_v27 = vunpack.i.h.bf16 %v2357_v7 }
  0xb4   :  { %v531_v33 = vmul.f32 %v2982_v48, %v2135_v42  ;;  %v2432_v45 = vadd.f32 %v524_v54, %v2226_v29 }
  0xb5   :  { %v2399_v9 = vpop.permute.xlu1 %1780  ;;  %v2401_v47 = vpop.permute.xlu0 %1775  ;;  %v530_v13 = vmul.f32 %v2983_v11, %v2135_v42  ;;  %v529_v32 = vmul.f32 %v2987_v27, %v2135_v42 }
  0xb6   :  { %2978 = vst [vmem:[#allocation30_spill] sm:$0xff] %v2399_v9  ;;  %2979 = vst [vmem:[#allocation31_spill] sm:$0xff] %v2401_v47  ;;  %v2984_v2 = vunpack.i.h.bf16 %v2399_v9  ;;  %v2985_v24 = vunpack.i.l.bf16 %v2399_v9 }
  0xb8   :  { %v535_v18 = vmul.f32 %v2984_v2, %v2135_v42  ;;  %v534_v12 = vmul.f32 %v2985_v24, %v2135_v42  ;;  %v2988_v24 = vunpack.i.l.bf16 %v2357_v7 }
  0xb9   :  { %v2439_v15 = vpop.permute.xlu1 %1790  ;;  %v2441_v11 = vpop.permute.xlu0 %1785 }
  0xba   :  { %2986 = vst [vmem:[#allocation34_spill] sm:$0xff] %v2439_v15  ;;  %v2444_v2 = vadd.f32 %v535_v18, %v2256_v58  ;;  %v2447_v3 = vadd.f32 %v534_v12, %v2262_v8  ;;  %v2935_v29 = vunpack.i.h.bf16 %v2439_v15  ;;  %v2936_v54 = vunpack.i.l.bf16 %v2439_v15 }
  0xbb   :  { %v528_v6 = vmul.f32 %v2988_v24, %v2135_v42  ;;  %v2460_v18 = vadd.f32 %v531_v33, %v2232_v34  ;;  %v2463_v8 = vadd.f32 %v530_v13, %v2238_v37  ;;  %v2989_v24 = vunpack.i.h.bf16 %v2401_v47 }
  0xbc   :  { %v539_v12 = vmul.f32 %v2935_v29, %v2135_v42  ;;  %v538_v27 = vmul.f32 %v2936_v54, %v2135_v42  ;;  %v2990_v58 = vunpack.i.l.bf16 %v2401_v47  ;;  %v2991_v37 = vunpack.i.h.bf16 %v2441_v11 }
  0xbd   :  { %v533_v48 = vmul.f32 %v2989_v24, %v2135_v42  ;;  %v2992_v13 = vunpack.i.l.bf16 %v2441_v11  ;;  %v1801_v26 = vpop.permute.xlu1 %1800  ;;  %v1796_v55 = vpop.permute.xlu0 %1795 }
  0xbe   :  { %v532_v34 = vmul.f32 %v2990_v58, %v2135_v42  ;;  %v537_v33 = vmul.f32 %v2991_v37, %v2135_v42  ;;  %v2484_v54 = vadd.f32 %v539_v12, %v2280_v21  ;;  %v2487_v15 = vadd.f32 %v538_v27, %v2288_v40 }
  0xbf   :  { %v536_v29 = vmul.f32 %v2992_v13, %v2135_v42  ;;  %v1803_v24 = vunpack.i.h.bf16 %v1801_v26  ;;  %v1802_v9 = vunpack.i.l.bf16 %v1801_v26  ;;  %v1798_v37 = vunpack.i.h.bf16 %v1796_v55 }
  0xc0   :  { %2993 = vst [vmem:[#allocation35_spill] sm:$0xff] %v2484_v54  ;;  %2994 = vst [vmem:[#allocation36_spill] sm:$0xff] %v2487_v15  ;;  %v2493_v47 = vadd.f32 %v537_v33, %v2294_v22  ;;  %v1797_v7 = vunpack.i.l.bf16 %v1796_v55  ;;  %v2496_v42 = vadd.f32 %v528_v6, %v2250_v49  ;;  %v2499_v13 = vadd.f32 %v529_v32, %v2244_v39 }
  0xc1   :  { %v2490_v58 = vadd.f32 %v536_v29, %v2302_v50  ;;  %v744_v21 = vmul.f32 %v1803_v24, %v2139_v44  ;;  %v743_v40 = vmul.f32 %v1802_v9, %v2139_v44  ;;  %v2504_v26 = vadd.f32 %v532_v34, %v2274_v30  ;;  %v1811_v29 = vpop.permute.xlu1 %1810  ;;  %v1806_v49 = vpop.permute.xlu0 %1805 }
  0xc2   :  { %v2507_v50 = vadd.f32 %v533_v48, %v2268_v16  ;;  %v742_v22 = vmul.f32 %v1798_v37, %v2139_v44  ;;  %v741_v55 = vmul.f32 %v1797_v7, %v2139_v44  ;;  %v1813_v32 = vunpack.i.h.bf16 %v1811_v29 }
  0xc3   :  { %v771_v6 = vadd.f32 %v743_v40, %v2311_v4  ;;  %v772_v39 = vadd.f32 %v744_v21, %v2314_v19  ;;  %v1812_v12 = vunpack.i.l.bf16 %v1811_v29  ;;  %v1808_v27 = vunpack.i.h.bf16 %v1806_v49 }
  0xc4   :  { %v769_v9 = vadd.f32 %v741_v55, %v2322_v35  ;;  %v770_v30 = vadd.f32 %v742_v22, %v2325_v62  ;;  %v1807_v34 = vunpack.i.l.bf16 %v1806_v49  ;;  %v748_v7 = vmul.f32 %v1813_v32, %v2139_v44 }
  0xc5   :  { %v2516_v16 = vadd.f32 %v2151_v52, %v771_v6  ;;  %v2519_v48 = vadd.f32 %v2145_v46, %v772_v39  ;;  %v747_v4 = vmul.f32 %v1812_v12, %v2139_v44  ;;  %v746_v35 = vmul.f32 %v1808_v27, %v2139_v44  ;;  %v1821_v24 = vpop.permute.xlu1 %1820  ;;  %v1816_v52 = vpop.permute.xlu0 %1815 }
  0xc6   :  { %v2524_v19 = vadd.f32 %v2181_v5, %v769_v9  ;;  %v2527_v33 = vadd.f32 %v2175_v0, %v770_v30  ;;  %v745_v62 = vmul.f32 %v1807_v34, %v2139_v44  ;;  %v776_v46 = vadd.f32 %v748_v7, %v2344_v61 }
  0xc7   :  { %v775_v37 = vadd.f32 %v747_v4, %v2347_v23  ;;  %v1823_v21 = vunpack.i.h.bf16 %v1821_v24  ;;  %v1822_v40 = vunpack.i.l.bf16 %v1821_v24  ;;  %v774_v5 = vadd.f32 %v746_v35, %v2360_v56 }
  0xc8   :  { %v773_v22 = vadd.f32 %v745_v62, %v2363_v59  ;;  %v1818_v55 = vunpack.i.h.bf16 %v1816_v52  ;;  %v1817_v29 = vunpack.i.l.bf16 %v1816_v52  ;;  %v2539_v49 = vadd.f32 %v2199_v14, %v776_v46  ;;  %v2995_v62 = vld [vmem:[#allocation4_spill] sm:$0xff] }
  0xc9   :  { %v2536_v0 = vadd.f32 %v2205_v17, %v775_v37  ;;  %v752_v6 = vmul.f32 %v1823_v21, %v2139_v44  ;;  %v751_v23 = vmul.f32 %v1822_v40, %v2139_v44  ;;  %v2547_v39 = vadd.f32 %v2163_v57, %v774_v5  ;;  %v1831_v32 = vpop.permute.xlu1 %1830  ;;  %v1826_v17 = vpop.permute.xlu0 %1825 }
  0xca   :  { %v2544_v61 = vadd.f32 %v2169_v60, %v773_v22  ;;  %v750_v56 = vmul.f32 %v1818_v55, %v2139_v44  ;;  %v749_v59 = vmul.f32 %v1817_v29, %v2139_v44  ;;  %v1833_v9 = vunpack.i.h.bf16 %v1831_v32  ;;  %v2996_v55 = vld [vmem:[#allocation10_spill] sm:$0xff] }
  0xcb   :  { %v779_v12 = vadd.f32 %v751_v23, %v2383_v51  ;;  %v780_v14 = vadd.f32 %v752_v6, %v2380_v20  ;;  %v1832_v30 = vunpack.i.l.bf16 %v1831_v32  ;;  %v1828_v34 = vunpack.i.h.bf16 %v1826_v17  ;;  %v2997_v6 = vld [vmem:[#allocation9_spill] sm:$0xff] }
  0xcc   :  { %v777_v27 = vadd.f32 %v749_v59, %v2388_v1  ;;  %v778_v60 = vadd.f32 %v750_v56, %v2391_v38  ;;  %v1827_v7 = vunpack.i.l.bf16 %v1826_v17  ;;  %v756_v35 = vmul.f32 %v1833_v9, %v2139_v44  ;;  %v2998_v59 = vld [vmem:[#allocation6_spill] sm:$0xff]  ;;  %v2999_v32 = vld [vmem:[#allocation5_spill] sm:$0xff] }
  0xcd   :  { %v2556_v57 = vadd.f32 %v2229_v31, %v779_v12  ;;  %v2559_v4 = vadd.f32 %v2223_v28, %v780_v14  ;;  %v755_v51 = vmul.f32 %v1832_v30, %v2139_v44  ;;  %v754_v1 = vmul.f32 %v1828_v34, %v2139_v44  ;;  %v1841_v52 = vpop.permute.xlu1 %1840  ;;  %v1836_v31 = vpop.permute.xlu0 %1835 }
  0xce   :  { %v2564_v20 = vadd.f32 %v2193_v10, %v777_v27  ;;  %v2567_v24 = vadd.f32 %v2995_v62, %v778_v60  ;;  %v753_v38 = vmul.f32 %v1827_v7, %v2139_v44  ;;  %v784_v28 = vadd.f32 %v756_v35, %v2412_v41  ;;  %v3000_v62 = vld [vmem:[#allocation14_spill] sm:$0xff] }
  0xcf   :  { %v783_v37 = vadd.f32 %v755_v51, %v2415_v25  ;;  %v1843_v46 = vunpack.i.h.bf16 %v1841_v52  ;;  %v1842_v21 = vunpack.i.l.bf16 %v1841_v52  ;;  %v782_v10 = vadd.f32 %v754_v1, %v2435_v36 }
  0xd0   :  { %v781_v40 = vadd.f32 %v753_v38, %v2432_v45  ;;  %v1838_v22 = vunpack.i.h.bf16 %v1836_v31  ;;  %v1837_v5 = vunpack.i.l.bf16 %v1836_v31  ;;  %v2579_v23 = vadd.f32 %v2997_v6, %v784_v28  ;;  %v3001_v38 = vld [vmem:[#allocation13_spill] sm:$0xff]  ;;  %v3003_v28 = vld [vmem:[#allocation7_spill] sm:$0xff] }
  0xd1   :  { %v2576_v29 = vadd.f32 %v2996_v55, %v783_v37  ;;  %v760_v56 = vmul.f32 %v1843_v46, %v2139_v44  ;;  %v759_v25 = vmul.f32 %v1842_v21, %v2139_v44  ;;  %v2587_v17 = vadd.f32 %v2999_v32, %v782_v10  ;;  %v1851_v12 = vpop.permute.xlu1 %1850  ;;  %v1846_v14 = vpop.permute.xlu0 %1845  ;;  %v3002_v37 = vld [vmem:[#allocation8_spill] sm:$0xff] }
  0xd2   :  { %v2584_v41 = vadd.f32 %v2998_v59, %v781_v40  ;;  %v758_v36 = vmul.f32 %v1838_v22, %v2139_v44  ;;  %v757_v45 = vmul.f32 %v1837_v5, %v2139_v44  ;;  %v1853_v27 = vunpack.i.h.bf16 %v1851_v12 }
  0xd3   :  { %v787_v9 = vadd.f32 %v759_v25, %v2463_v8  ;;  %v788_v30 = vadd.f32 %v760_v56, %v2460_v18  ;;  %v1852_v60 = vunpack.i.l.bf16 %v1851_v12  ;;  %v1848_v35 = vunpack.i.h.bf16 %v1846_v14 }
  0xd4   :  { %v785_v34 = vadd.f32 %v757_v45, %v2496_v42  ;;  %v786_v7 = vadd.f32 %v758_v36, %v2499_v13  ;;  %v1847_v51 = vunpack.i.l.bf16 %v1846_v14  ;;  %v764_v31 = vmul.f32 %v1853_v27, %v2139_v44  ;;  %v3012_v27 = vld [vmem:[#allocation11_spill] sm:$0xff] }
  0xd5   :  { %v2596_v1 = vadd.f32 %v3000_v62, %v787_v9  ;;  %v2599_v52 = vadd.f32 %v3001_v38, %v788_v30  ;;  %v763_v8 = vmul.f32 %v1852_v60, %v2139_v44  ;;  %v762_v42 = vmul.f32 %v1848_v35, %v2139_v44  ;;  %v2611_v21 = vpop.permute.xlu1 %1860  ;;  %v1856_v40 = vpop.permute.xlu0 %1855  ;;  %v3008_v9 = vld [vmem:[#allocation18_spill] sm:$0xff] }
  0xd6   :  { %v2604_v18 = vadd.f32 %v3002_v37, %v785_v34  ;;  %v2607_v46 = vadd.f32 %v3003_v28, %v786_v7  ;;  %v761_v13 = vmul.f32 %v1847_v51, %v2139_v44  ;;  %v3004_v10 = vunpack.i.h.bf16 %v2327_v63  ;;  %v3014_v51 = vld [vmem:[#allocation25_spill] sm:$0xff]  ;;  %v3017_v37 = vld [vmem:[#allocation30_spill] sm:$0xff] }
  0xd7   :  { %v3005_v5 = vunpack.i.l.bf16 %v2327_v63  ;;  %v791_v6 = vadd.f32 %v763_v8, %v2447_v3  ;;  %v792_v56 = vadd.f32 %v764_v31, %v2444_v2  ;;  %v790_v59 = vadd.f32 %v762_v42, %v2507_v50  ;;  %v3010_v2 = vld [vmem:[#allocation17_spill] sm:$0xff] }
  0xd8   :  { %v2616_v22 = vmul.f32 %v3004_v10, %v2137_v43  ;;  %v789_v25 = vadd.f32 %v761_v13, %v2504_v26  ;;  %v1858_v32 = vunpack.i.h.bf16 %v1856_v40  ;;  %v1857_v36 = vunpack.i.l.bf16 %v1856_v40  ;;  %v3011_v26 = vld [vmem:[#allocation12_spill] sm:$0xff]  ;;  %v3020_v10 = vld [vmem:[#allocation31_spill] sm:$0xff] }
  0xd9   :  { %v2621_v55 = vmul.f32 %v3005_v5, %v2137_v43  ;;  %v3006_v45 = vunpack.i.h.bf16 %v2355_v53  ;;  %v3007_v63 = vunpack.i.l.bf16 %v2355_v53  ;;  %v2638_v3 = vadd.f32 %v3008_v9, %v791_v6  ;;  %v2651_v35 = vpop.permute.xlu1 %1870  ;;  %v2653_v53 = vpop.permute.xlu0 %1865 }
  0xda   :  { %v2641_v30 = vadd.f32 %v3010_v2, %v792_v56  ;;  %v2644_v50 = vadd.f32 %v3011_v26, %v789_v25  ;;  %v2647_v60 = vadd.f32 %v3012_v27, %v790_v59  ;;  %v766_v34 = vmul.f32 %v1858_v32, %v2139_v44  ;;  %3013 = vst [vmem:[#allocation10_spill] sm:$0xff] %v2651_v35  ;;  %v3028_v27 = vld [vmem:[#allocation19_spill] sm:$0xff] }
  0xdb   :  { %v2630_v12 = vmul.f32 %v3006_v45, %v2137_v43  ;;  %v2635_v14 = vmul.f32 %v3007_v63, %v2137_v43  ;;  %3009 = vst [vmem:[#allocation4_spill] sm:$0xff] %v2638_v3  ;;  %v765_v7 = vmul.f32 %v1857_v36, %v2139_v44  ;;  %v3015_v62 = vunpack.i.h.bf16 %v3014_v51  ;;  %v2690_v36 = vld [vmem:[%s2931_s2] ss:$0 sm:$0xff] }
  0xdc   :  { %v3016_v31 = vunpack.i.l.bf16 %v3014_v51  ;;  %v3018_v28 = vunpack.i.h.bf16 %v3017_v37  ;;  %v3019_v13 = vunpack.i.l.bf16 %v3017_v37  ;;  %v3021_v5 = vunpack.i.h.bf16 %v3020_v10  ;;  %v3023_v45 = vld [vmem:[#allocation34_spill] sm:$0xff]  ;;  %v3034_v37 = vld [vmem:[#allocation16_spill] sm:$0xff] }
  0xdd   :  { %v2658_v38 = vmul.f32 %v3015_v62, %v2137_v43  ;;  %v3022_v56 = vunpack.i.l.bf16 %v3020_v10  ;;  %v793_v59 = vadd.f32 %v765_v7, %v2490_v58  ;;  %v794_v32 = vadd.f32 %v766_v34, %v2493_v47  ;;  %v3029_v47 = vld [vmem:[#allocation20_spill] sm:$0xff] }
  0xde   :  { %v2663_v8 = vmul.f32 %v3016_v31, %v2137_v43  ;;  %v2668_v42 = vmul.f32 %v3018_v28, %v2137_v43  ;;  %v2673_v40 = vmul.f32 %v3019_v13, %v2137_v43  ;;  %v2678_v6 = vmul.f32 %v3021_v5, %v2137_v43  ;;  %v3036_v13 = vld [vmem:[#allocation15_spill] sm:$0xff]  ;;  %v1065_v5 = vpop.permute.xlu0 %1064 }
  0xdf   :  { %v2683_v25 = vmul.f32 %v3022_v56, %v2137_v43  ;;  %v3024_v63 = vunpack.i.h.bf16 %v3023_v45  ;;  %v3026_v2 = vunpack.i.l.bf16 %v3023_v45  ;;  %v916_v58 = vadd.f32 %v3028_v27, %v2527_v33  ;;  %v1070_v33 = vpop.permute.xlu1 %1069  ;;  %v3038_v45 = vld [vmem:[#allocation23_spill] sm:$0xff] }
  0xe0   :  { %v915_v34 = vadd.f32 %v3029_v47, %v2524_v19  ;;  %v3030_v7 = vunpack.i.h.bf16 %v2441_v11  ;;  %v3032_v62 = vunpack.i.l.bf16 %v2441_v11  ;;  %v2717_v28 = vadd.f32 %v3034_v37, %v793_v59  ;;  %v3039_v11 = vld [vmem:[#allocation24_spill] sm:$0xff] }
  0xe1   :  { %v2695_v9 = vmul.f32 %v3024_v63, %v2137_v43  ;;  %v2700_v26 = vmul.f32 %v3026_v2, %v2137_v43  ;;  %v2720_v10 = vadd.f32 %v3036_v13, %v794_v32  ;;  %v951_v19 = vadd.f32 %v2690_v36, %v916_v58  ;;  %v3040_v32 = vld [vmem:[#allocation21_spill] sm:$0xff]  ;;  %v3042_v59 = vld [vmem:[#allocation28_spill] sm:$0xff] }
  0xe2   :  { %v2709_v51 = vmul.f32 %v3030_v7, %v2137_v43  ;;  %v2714_v31 = vmul.f32 %v3032_v62, %v2137_v43  ;;  %3035 = vst [vmem:[#allocation13_spill] sm:$0xff] %v2717_v28  ;;  %v950_v56 = vadd.f32 %v2690_v36, %v915_v34  ;;  %v918_v63 = vadd.f32 %v3038_v45, %v2519_v48  ;;  %v3041_v7 = vld [vmem:[#allocation22_spill] sm:$0xff]  ;;  %v1075_v45 = vpop.permute.xlu0 %1074 }
  0xe3   :  { %3025 = vst [vmem:[#allocation9_spill] sm:$0xff] %v2695_v9  ;;  %3027 = vst [vmem:[#allocation6_spill] sm:$0xff] %v2700_v26  ;;  %v917_v2 = vadd.f32 %v3039_v11, %v2516_v16  ;;  %v920_v47 = vadd.f32 %v3040_v32, %v2547_v39  ;;  %v919_v62 = vadd.f32 %v3041_v7, %v2544_v61  ;;  %v979_v37 = vmul.f32 0.1, %v951_v19  ;;  %v1080_v48 = vpop.permute.xlu1 %1079  ;;  %v3043_v39 = vld [vmem:[#allocation29_spill] sm:$0xff] }
  0xe4   :  { %3031 = vst [vmem:[#allocation5_spill] sm:$0xff] %v2709_v51  ;;  %3033 = vst [vmem:[#allocation14_spill] sm:$0xff] %v2714_v31  ;;  %v978_v58 = vmul.f32 0.1, %v950_v56  ;;  %v953_v34 = vadd.f32 %v2690_v36, %v918_v63  ;;  %v922_v27 = vadd.f32 %v3042_v59, %v2539_v49  ;;  %v921_v32 = vadd.f32 %v3043_v39, %v2536_v0 }
  0xe5   :  { %3037 = vst [vmem:[#allocation8_spill] sm:$0xff] %v2720_v10  ;;  %v952_v13 = vadd.f32 %v2690_v36, %v917_v2  ;;  %v955_v16 = vadd.f32 %v2690_v36, %v920_v47  ;;  %v954_v11 = vadd.f32 %v2690_v36, %v919_v62  ;;  %v1007_v43 = vmax.f32 %v951_v19, %v979_v37 }
  0xe6   :  { %v1006_v61 = vmax.f32 %v950_v56, %v978_v58  ;;  %v981_v7 = vmul.f32 0.1, %v953_v34  ;;  %v957_v2 = vadd.f32 %v2690_v36, %v922_v27  ;;  %v956_v15 = vadd.f32 %v2690_v36, %v921_v32  ;;  %v1085_v49 = vpop.permute.xlu0 %1084 }
  0xe7   :  { %v980_v35 = vmul.f32 0.1, %v952_v13  ;;  %v983_v54 = vmul.f32 0.1, %v955_v16  ;;  %v982_v63 = vmul.f32 0.1, %v954_v11  ;;  %v1203_v26 = vmul.f32 %v1070_v33, %v1007_v43  ;;  %v1090_v9 = vpop.permute.xlu1 %1089 }
  0xe8   :  { %v1202_v47 = vmul.f32 %v1065_v5, %v1006_v61  ;;  %v1009_v28 = vmax.f32 %v953_v34, %v981_v7  ;;  %v985_v31 = vmul.f32 0.1, %v957_v2  ;;  %v984_v0 = vmul.f32 0.1, %v956_v15 }
  0xe9   :  { %v1008_v62 = vmax.f32 %v952_v13, %v980_v35  ;;  %v1011_v10 = vmax.f32 %v955_v16, %v983_v54  ;;  %v1010_v59 = vmax.f32 %v954_v11, %v982_v63  ;;  %v1405_v19 = vpack.c.bf16 %v1203_v26, %v1203_v26  ;;  %v3044_v35 = vld [vmem:[#allocation26_spill] sm:$0xff] }
  0xea   :  { %v1404_v56 = vpack.c.bf16 %v1202_v47, %v1202_v47  ;;  %v1205_v37 = vmul.f32 %v1080_v48, %v1009_v28  ;;  %v1013_v51 = vmax.f32 %v957_v2, %v985_v31  ;;  %v1012_v27 = vmax.f32 %v956_v15, %v984_v0  ;;  %v1095_v33 = vpop.permute.xlu0 %1094 }
  0xeb   :  { %v1204_v58 = vmul.f32 %v1075_v45, %v1008_v62  ;;  %v1207_v39 = vmul.f32 %v1090_v9, %v1011_v10  ;;  %v1206_v3 = vmul.f32 %v1085_v49, %v1010_v59  ;;  %1344 = vst.msk [vmem:[%s2932_s4 + $0x4] sm:$0xf] %vm1342_vm0, %v1405_v19  ;;  %v924_v26 = vadd.f32 %v3044_v35, %v2567_v24  ;;  %v3045_v9 = vld [vmem:[#allocation27_spill] sm:$0xff]  ;;  %v1100_v10 = vpop.permute.xlu1 %1099 }
  0xec   :  { %1343 = vst.msk [vmem:[%s2932_s4] sm:$0xf] %vm1342_vm0, %v1404_v56  ;;  %v1407_v43 = vpack.c.bf16 %v1205_v37, %v1205_v37  ;;  %v923_v28 = vadd.f32 %v3045_v9, %v2564_v20  ;;  %v926_v5 = vadd.f32 %v2616_v22, %v2559_v4  ;;  %v925_v34 = vadd.f32 %v2621_v55, %v2556_v57  ;;  %v3046_v22 = vld [vmem:[#allocation32_spill] sm:$0xff] }
  0xed   :  { %v1406_v54 = vpack.c.bf16 %v1204_v58, %v1204_v58  ;;  %v1409_v31 = vpack.c.bf16 %v1207_v39, %v1207_v39  ;;  %v1408_v15 = vpack.c.bf16 %v1206_v3, %v1206_v3  ;;  %v1209_v20 = vmul.f32 %v1100_v10, %v1013_v51  ;;  %v3047_v51 = vld [vmem:[#allocation33_spill] sm:$0xff] }
  0xee   :  { %1346 = vst.msk [vmem:[%s2932_s4 + $0xc] sm:$0xf] %vm1342_vm0, %v1407_v43  ;;  %v1208_v24 = vmul.f32 %v1095_v33, %v1012_v27  ;;  %v959_v3 = vadd.f32 %v2690_v36, %v924_v26  ;;  %v958_v13 = vadd.f32 %v2690_v36, %v923_v28  ;;  %v961_v57 = vadd.f32 %v2690_v36, %v926_v5  ;;  %v1105_v7 = vpop.permute.xlu0 %1104 }
  0xef   :  { %1345 = vst.msk [vmem:[%s2932_s4 + $0x8] sm:$0xf] %vm1342_vm0, %v1406_v54  ;;  %1348 = vst.msk [vmem:[%s2932_s4 + $0x14] sm:$0xf] %vm1342_vm0, %v1409_v31  ;;  %v960_v4 = vadd.f32 %v2690_v36, %v925_v34  ;;  %v928_v55 = vadd.f32 %v3046_v22, %v2587_v17  ;;  %v927_v48 = vadd.f32 %v3047_v51, %v2584_v41  ;;  %v1110_v61 = vpop.permute.xlu1 %1109  ;;  %v3048_v34 = vunpack.i.h.bf16 %v2611_v21 }
  0xf0   :  { %1347 = vst.msk [vmem:[%s2932_s4 + $0x10] sm:$0xf] %vm1342_vm0, %v1408_v15  ;;  %v1411_v45 = vpack.c.bf16 %v1209_v20, %v1209_v20  ;;  %v1410_v16 = vpack.c.bf16 %v1208_v24, %v1208_v24  ;;  %v987_v11 = vmul.f32 0.1, %v959_v3  ;;  %v986_v32 = vmul.f32 0.1, %v958_v13 }
  0xf1   :  { %v989_v63 = vmul.f32 0.1, %v961_v57  ;;  %v988_v2 = vmul.f32 0.1, %v960_v4  ;;  %v963_v47 = vadd.f32 %v2690_v36, %v928_v55  ;;  %v962_v62 = vadd.f32 %v2690_v36, %v927_v48 }
  0xf2   :  { %1350 = vst.msk [vmem:[%s2932_s4 + $0x1c] sm:$0xf] %vm1342_vm0, %v1411_v45  ;;  %1349 = vst.msk [vmem:[%s2932_s4 + $0x18] sm:$0xf] %vm1342_vm0, %v1410_v16  ;;  %v1015_v41 = vmax.f32 %v959_v3, %v987_v11  ;;  %v1014_v17 = vmax.f32 %v958_v13, %v986_v32  ;;  %v930_v49 = vadd.f32 %v2658_v38, %v2579_v23  ;;  %v1115_v35 = vpop.permute.xlu0 %1114  ;;  %v3049_v24 = vunpack.i.l.bf16 %v2611_v21  ;;  %v3050_v11 = vld [vmem:[#allocation2_spill] sm:$0xff] }
  0xf3   :  { %v929_v59 = vadd.f32 %v2663_v8, %v2576_v29  ;;  %v1017_v0 = vmax.f32 %v961_v57, %v989_v63  ;;  %v1016_v19 = vmax.f32 %v960_v4, %v988_v2  ;;  %v991_v56 = vmul.f32 0.1, %v963_v47  ;;  %v1120_v54 = vpop.permute.xlu1 %1119  ;;  %v3051_v2 = vld [vmem:[#allocation5_spill] sm:$0xff] }
  0xf4   :  { %v990_v37 = vmul.f32 0.1, %v962_v62  ;;  %v1211_v58 = vmul.f32 %v1110_v61, %v1015_v41  ;;  %v1210_v39 = vmul.f32 %v1105_v7, %v1014_v17  ;;  %v965_v27 = vadd.f32 %v2690_v36, %v930_v49  ;;  %v3053_v41 = vld [vmem:[#allocation14_spill] sm:$0xff] }
  0xf5   :  { %v964_v43 = vadd.f32 %v2690_v36, %v929_v59  ;;  %v1019_v26 = vmax.f32 %v963_v47, %v991_v56  ;;  %v932_v23 = vadd.f32 %v2630_v12, %v2607_v46  ;;  %v931_v29 = vadd.f32 %v2635_v14, %v2604_v18 }
  0xf6   :  { %v1018_v9 = vmax.f32 %v962_v62, %v990_v37  ;;  %v1413_v38 = vpack.c.bf16 %v1211_v58, %v1211_v58  ;;  %v1412_v8 = vpack.c.bf16 %v1210_v39, %v1210_v39  ;;  %v1213_v28 = vmul.f32 %v1120_v54, %v1017_v0  ;;  %v1125_v22 = vpop.permute.xlu0 %1124  ;;  %v3052_v62 = vld [vmem:[#allocation4_spill] sm:$0xff]  ;;  %v3055_v58 = vld [vmem:[#allocation9_spill] sm:$0xff] }
  0xf7   :  { %v1212_v31 = vmul.f32 %v1115_v35, %v1016_v19  ;;  %v993_v15 = vmul.f32 0.1, %v965_v27  ;;  %v992_v10 = vmul.f32 0.1, %v964_v43  ;;  %v967_v33 = vadd.f32 %v2690_v36, %v932_v23  ;;  %v1130_v4 = vpop.permute.xlu1 %1129  ;;  %v3054_v37 = vld [vmem:[#allocation8_spill] sm:$0xff] }
  0xf8   :  { %v966_v5 = vadd.f32 %v2690_v36, %v931_v29  ;;  %1352 = vst.msk [vmem:[%s2932_s4 + $0x24] sm:$0xf] %vm1342_vm0, %v1413_v38  ;;  %1351 = vst.msk [vmem:[%s2932_s4 + $0x20] sm:$0xf] %vm1342_vm0, %v1412_v8  ;;  %v1415_v18 = vpack.c.bf16 %v1213_v28, %v1213_v28  ;;  %v934_v12 = vadd.f32 %v2678_v6, %v2599_v52  ;;  %v1868_v13 = vunpack.i.h.bf16 %v2653_v53  ;;  %v3058_v35 = vld [vmem:[#allocation36_spill] sm:$0xff]  ;;  %v3060_v29 = vld [vmem:[#allocation10_spill] sm:$0xff] }
  0xf9   :  { %v1414_v46 = vpack.c.bf16 %v1212_v31, %v1212_v31  ;;  %v933_v14 = vadd.f32 %v2683_v25, %v2596_v1  ;;  %v768_v20 = vmul.f32 %v3048_v34, %v2139_v44  ;;  %v767_v3 = vmul.f32 %v3049_v24, %v2139_v44 }
  0xfa   :  { %v1867_v57 = vunpack.i.l.bf16 %v2653_v53  ;;  %1354 = vst.msk [vmem:[%s2932_s4 + $0x2c] sm:$0xf] %vm1342_vm0, %v1415_v18  ;;  %v1215_v1 = vmul.f32 %v1130_v4, %v1019_v26  ;;  %v1214_v52 = vmul.f32 %v1125_v22, %v1018_v9  ;;  %v995_v21 = vmul.f32 0.1, %v967_v33  ;;  %v1135_v63 = vpop.permute.xlu0 %1134  ;;  %v3059_v9 = vld [vmem:[#allocation35_spill] sm:$0xff] }
  0xfb   :  { %1353 = vst.msk [vmem:[%s2932_s4 + $0x28] sm:$0xf] %vm1342_vm0, %v1414_v46  ;;  %v994_v44 = vmul.f32 0.1, %v966_v5  ;;  %v969_v6 = vadd.f32 %v2690_v36, %v934_v12  ;;  %v968_v53 = vadd.f32 %v2690_v36, %v933_v14  ;;  %v936_v25 = vadd.f32 %v2668_v42, %v2647_v60  ;;  %v1140_v7 = vpop.permute.xlu1 %1139 }
  0xfc   :  { %v935_v55 = vadd.f32 %v2673_v40, %v2644_v50  ;;  %v1417_v51 = vpack.c.bf16 %v1215_v1, %v1215_v1  ;;  %v1416_v48 = vpack.c.bf16 %v1214_v52, %v1214_v52  ;;  %v1021_v45 = vmax.f32 %v965_v27, %v993_v15  ;;  %v3056_v27 = vld [vmem:[#allocation13_spill] sm:$0xff] }
  0xfd   :  { %v1020_v16 = vmax.f32 %v964_v43, %v992_v10  ;;  %v841_v32 = vmul.f32 %v1868_v13, %v3050_v11  ;;  %v840_v61 = vmul.f32 %v1867_v57, %v3050_v11  ;;  %v938_v47 = vadd.f32 %v3051_v2, %v2641_v30  ;;  %v3057_v43 = vld [vmem:[#allocation6_spill] sm:$0xff]  ;;  %v3061_v13 = vld [vmem:[#allocation3_spill] sm:$0xff] }
  0xfe   :  { %v937_v17 = vadd.f32 %v3053_v41, %v3052_v62  ;;  %1356 = vst.msk [vmem:[%s2932_s4 + $0x34] sm:$0xf] %vm1342_vm0, %v1417_v51  ;;  %1355 = vst.msk [vmem:[%s2932_s4 + $0x30] sm:$0xf] %vm1342_vm0, %v1416_v48  ;;  %v1217_v50 = vmul.f32 %v1140_v7, %v1021_v45  ;;  %v971_v42 = vadd.f32 %v2690_v36, %v936_v25  ;;  %v997_v59 = vmul.f32 0.1, %v969_v6  ;;  %v1145_v31 = vpop.permute.xlu0 %1144 }
  0xff   :  { %v1216_v60 = vmul.f32 %v1135_v63, %v1020_v16  ;;  %v970_v40 = vadd.f32 %v2690_v36, %v935_v55  ;;  %v1023_v30 = vmax.f32 %v967_v33, %v995_v21  ;;  %v1022_v49 = vmax.f32 %v966_v5, %v994_v44  ;;  %v1150_v28 = vpop.permute.xlu1 %1149 }
 0x100   :  { %v996_v0 = vmul.f32 0.1, %v968_v53  ;;  %v1419_v19 = vpack.c.bf16 %v1217_v50, %v1217_v50  ;;  %v940_v39 = vadd.f32 %v3055_v58, %v3054_v37  ;;  %v939_v54 = vadd.f32 %v3057_v43, %v3056_v27 }
 0x101   :  { %v1418_v56 = vpack.c.bf16 %v1216_v60, %v1216_v60  ;;  %v795_v26 = vadd.f32 %v767_v3, %v3058_v35  ;;  %v796_v23 = vadd.f32 %v768_v20, %v3059_v9  ;;  %v1873_v38 = vunpack.i.h.bf16 %v3060_v29 }
 0x102   :  { %v1872_v8 = vunpack.i.l.bf16 %v3060_v29  ;;  %1358 = vst.msk [vmem:[%s2932_s4 + $0x3c] sm:$0xf] %vm1342_vm0, %v1419_v19  ;;  %v1219_v15 = vmul.f32 %v1150_v28, %v1023_v30  ;;  %v1218_v10 = vmul.f32 %v1145_v31, %v1022_v49  ;;  %v999_v33 = vmul.f32 0.1, %v971_v42  ;;  %v1155_v1 = vpop.permute.xlu0 %1154 }
 0x103   :  { %1357 = vst.msk [vmem:[%s2932_s4 + $0x38] sm:$0xf] %vm1342_vm0, %v1418_v56  ;;  %v998_v5 = vmul.f32 0.1, %v970_v40  ;;  %v869_v18 = vadd.f32 %v841_v32, %v796_v23  ;;  %v868_v46 = vadd.f32 %v840_v61, %v795_v26  ;;  %v973_v12 = vadd.f32 %v2690_v36, %v938_v47  ;;  %v1160_v22 = vpop.permute.xlu1 %1159 }
 0x104   :  { %v972_v14 = vadd.f32 %v2690_v36, %v937_v17  ;;  %v1421_v34 = vpack.c.bf16 %v1219_v15, %v1219_v15  ;;  %v1420_v20 = vpack.c.bf16 %v1218_v10, %v1218_v10  ;;  %v1025_v24 = vmax.f32 %v969_v6, %v997_v59 }
 0x105   :  { %v1024_v3 = vmax.f32 %v968_v53, %v996_v0  ;;  %v914_v57 = vmul.f32 %v1873_v38, %v3061_v13  ;;  %v913_v4 = vmul.f32 %v1872_v8, %v3061_v13  ;;  %v1027_v44 = vmax.f32 %v971_v42, %v999_v33 }
 0x106   :  { %1360 = vst.msk [vmem:[%s2932_s4 + $0x44] sm:$0xf] %vm1342_vm0, %v1421_v34  ;;  %1359 = vst.msk [vmem:[%s2932_s4 + $0x40] sm:$0xf] %vm1342_vm0, %v1420_v20  ;;  %v1221_v52 = vmul.f32 %v1160_v22, %v1025_v24  ;;  %v1026_v6 = vmax.f32 %v970_v40, %v998_v5  ;;  %v1001_v53 = vmul.f32 0.1, %v973_v12  ;;  %v975_v55 = vadd.f32 %v2690_v36, %v940_v39  ;;  %v1165_v61 = vpop.permute.xlu0 %1164 }
 0x107   :  { %v1220_v21 = vmul.f32 %v1155_v1, %v1024_v3  ;;  %v1000_v25 = vmul.f32 0.1, %v972_v14  ;;  %v974_v51 = vadd.f32 %v2690_v36, %v939_v54  ;;  %v942_v16 = vadd.f32 %v914_v57, %v869_v18  ;;  %v1170_v32 = vpop.permute.xlu1 %1169 }
 0x108   :  { %v1423_v48 = vpack.c.bf16 %v1221_v52, %v1221_v52  ;;  %v941_v11 = vadd.f32 %v913_v4, %v868_v46  ;;  %v1223_v7 = vmul.f32 %v1170_v32, %v1027_v44  ;;  %v1222_v63 = vmul.f32 %v1165_v61, %v1026_v6 }
 0x109   :  { %v1422_v45 = vpack.c.bf16 %v1220_v21, %v1220_v21  ;;  %v1029_v2 = vmax.f32 %v973_v12, %v1001_v53  ;;  %v1028_v47 = vmax.f32 %v972_v14, %v1000_v25  ;;  %v1003_v62 = vmul.f32 0.1, %v975_v55 }
 0x10a   :  { %1362 = vst.msk [vmem:[%s2932_s4 + $0x4c] sm:$0xf] %vm1342_vm0, %v1423_v48  ;;  %v1002_v41 = vmul.f32 0.1, %v974_v51  ;;  %v1425_v17 = vpack.c.bf16 %v1223_v7, %v1223_v7  ;;  %v1424_v50 = vpack.c.bf16 %v1222_v63, %v1222_v63  ;;  %v977_v60 = vadd.f32 %v2690_v36, %v942_v16  ;;  %v1175_v30 = vpop.permute.xlu0 %1174 }
 0x10b   :  { %1361 = vst.msk [vmem:[%s2932_s4 + $0x48] sm:$0xf] %vm1342_vm0, %v1422_v45  ;;  %v976_v42 = vadd.f32 %v2690_v36, %v941_v11  ;;  %v1180_v40 = vpop.permute.xlu1 %1179  ;;  %v1224_v59 = vmul.f32 %v1175_v30, %v1028_v47  ;;  %v1031_v0 = vmax.f32 %v975_v55, %v1003_v62 }
 0x10c   :  { %1364 = vst.msk [vmem:[%s2932_s4 + $0x54] sm:$0xf] %vm1342_vm0, %v1425_v17  ;;  %1363 = vst.msk [vmem:[%s2932_s4 + $0x50] sm:$0xf] %vm1342_vm0, %v1424_v50  ;;  %v1225_v49 = vmul.f32 %v1180_v40, %v1029_v2  ;;  %v1030_v19 = vmax.f32 %v974_v51, %v1002_v41  ;;  %v1005_v58 = vmul.f32 0.1, %v977_v60 }
 0x10d   :  { %v1426_v37 = vpack.c.bf16 %v1224_v59, %v1224_v59  ;;  %v1004_v36 = vmul.f32 0.1, %v976_v42 }
 0x10e   :  { %v1427_v56 = vpack.c.bf16 %v1225_v49, %v1225_v49  ;;  %v1185_v27 = vpop.permute.xlu0 %1184  ;;  %v1033_v9 = vmax.f32 %v977_v60, %v1005_v58 }
 0x10f   :  { %v1190_v39 = vpop.permute.xlu1 %1189  ;;  %1365 = vst.msk [vmem:[%s2932_s4 + $0x58] sm:$0xf] %vm1342_vm0, %v1426_v37  ;;  %v1226_v54 = vmul.f32 %v1185_v27, %v1030_v19  ;;  %v1032_v23 = vmax.f32 %v976_v42, %v1004_v36 }
 0x110   :  { %1366 = vst.msk [vmem:[%s2932_s4 + $0x5c] sm:$0xf] %vm1342_vm0, %v1427_v56  ;;  %v1227_v43 = vmul.f32 %v1190_v39, %v1031_v0 }
 0x111   :  { %v1428_v26 = vpack.c.bf16 %v1226_v54, %v1226_v54 }
 0x112   :  { %v1429_v35 = vpack.c.bf16 %v1227_v43, %v1227_v43  ;;  %v1195_v38 = vpop.permute.xlu0 %1194 }
 0x113   :  { %v1200_v29 = vpop.permute.xlu1 %1199  ;;  %1367 = vst.msk [vmem:[%s2932_s4 + $0x60] sm:$0xf] %vm1342_vm0, %v1428_v26  ;;  %v1228_v28 = vmul.f32 %v1195_v38, %v1032_v23 }
 0x114   :  { %1368 = vst.msk [vmem:[%s2932_s4 + $0x64] sm:$0xf] %vm1342_vm0, %v1429_v35  ;;  %v1229_v8 = vmul.f32 %v1200_v29, %v1033_v9 }
 0x115   :  { %v1430_v15 = vpack.c.bf16 %v1228_v28, %v1228_v28 }
 0x116   :  { %v1431_v31 = vpack.c.bf16 %v1229_v8, %v1229_v8 }
 0x117   :  { %1369 = vst.msk [vmem:[%s2932_s4 + $0x68] sm:$0xf] %vm1342_vm0, %v1430_v15 }
 0x118   :  { %1370 = vst.msk [vmem:[%s2932_s4 + $0x6c] sm:$0xf] %vm1342_vm0, %v1431_v31 }

</bundles_post_ra>
